<compile_context>
chip_gen: v7x
topology: tpu7x:2x2x1
jax: 0.10.0
libtpu: 0.0.40
codegen_flags: <defaults>
</compile_context>

<pallas_src>
import functools

import jax
import jax.numpy as jnp
import numpy as np
from jax import lax
from jax.experimental import pallas as pl
from jax.experimental.pallas import tpu as pltpu  # noqa: F401  (TPU backend)


# ----------------------------- kernel -------------------------------------- #

def _fused_ca_kernel(xh_ref, xb_ref, w_ref, oh_ref, ob_ref, *,
                     num_heads, head_size):
    """Full multi-head cross attention in one invocation.

    xh_ref / xb_ref : (B, T, E)            head / body sequences
    w_ref           : (2, E+H*hs+1, C)     packed weight slab per sequence:
                        rows [0, E)        -> fused [Q|K|V] weights (scale in Q)
                        rows [E, E+H*hs)   -> output projection weight
                        row  E+H*hs        -> output projection bias
    oh_ref / ob_ref : (B, T, E)            projected outputs
    """
    B, T, E = xh_ref.shape
    H, hs = num_heads, head_size
    Hhs = H * hs

    # ---- unpack the single weight slab (static slices) ---------------------
    w_head = w_ref[0]                                  # (E + Hhs + 1, C)
    w_body = w_ref[1]
    wqkv_h = w_head[:E, :3 * Hhs]                      # (E, 3*Hhs)
    wqkv_b = w_body[:E, :3 * Hhs]
    wp_h = w_head[E:E + Hhs, :E]                       # (Hhs, E)
    wp_b = w_body[E:E + Hhs, :E]
    bias_h = w_head[E + Hhs:E + Hhs + 1, :E]           # (1, E)
    bias_b = w_body[E + Hhs:E + Hhs + 1, :E]

    # ---- fused QKV projection: one wide MXU pass per sequence --------------
    xh = xh_ref[...].reshape(B * T, E)
    xb = xb_ref[...].reshape(B * T, E)
    ph = jnp.dot(xh, wqkv_h, preferred_element_type=jnp.float32)  # (B*T, 3*Hhs)
    pb = jnp.dot(xb, wqkv_b, preferred_element_type=jnp.float32)

    def attend(q, k, v):
        # Contract the last axis of both operands: no k.T materialized.
        s = lax.dot_general(q, k, (((1,), (1,)), ((), ())),
                            preferred_element_type=jnp.float32)    # (T, T)
        s = s - jnp.max(s, axis=-1, keepdims=True)
        p = jnp.exp(s)
        inv = pl.reciprocal(jnp.sum(p, axis=-1, keepdims=True), approx=True)
        # Normalize AFTER the PV matmul: T*hs scaled elements instead of T*T.
        return jnp.dot(p, v, preferred_element_type=jnp.float32) * inv

    # Accumulators start at the projection bias (broadcast once, hoisted out
    # of the loops — broadcast_in_dim is not CSE'd by JAX).
    acc_head = [jnp.broadcast_to(bias_h, (T, E))] * B
    acc_body = [jnp.broadcast_to(bias_b, (T, E))] * B

    for h in range(H):                       # static loops: H, B are tiny
        cq = slice(h * hs, (h + 1) * hs)
        ck = slice(Hhs + h * hs, Hhs + (h + 1) * hs)
        cv = slice(2 * Hhs + h * hs, 2 * Hhs + (h + 1) * hs)
        wph = wp_h[h * hs:(h + 1) * hs, :]   # (hs, E) per-head projection slice
        wpb = wp_b[h * hs:(h + 1) * hs, :]
        for b in range(B):
            r = slice(b * T, (b + 1) * T)
            o_h = attend(ph[r, cq], pb[r, ck], pb[r, cv])   # head attends body
            o_b = attend(pb[r, cq], ph[r, ck], ph[r, cv])   # body attends head
            # Per-head projection accumulate — replaces the lane-axis concat.
            acc_head[b] = acc_head[b] + jnp.dot(
                o_h, wph, preferred_element_type=jnp.float32)
            acc_body[b] = acc_body[b] + jnp.dot(
                o_b, wpb, preferred_element_type=jnp.float32)

    for b in range(B):
        oh_ref[b] = acc_head[b].astype(oh_ref.dtype)
        ob_ref[b] = acc_body[b].astype(ob_ref.dtype)


# ----------------------------- wrapper -------------------------------------- #

def prepare_fused_params(params):
    """One-time weight re-layout into a single packed slab (not the hot path)."""
    H, E, hs = params["wq_head"].shape
    Hhs = H * hs
    scale = float(hs) ** -0.5
    cols = max(3 * Hhs, E)

    def flat(w):                                   # (H, E, hs) -> (E, H*hs)
        return jnp.transpose(w, (1, 0, 2)).reshape(E, Hhs)

    def pad_cols(m):
        return jnp.pad(m, ((0, 0), (0, cols - m.shape[-1])))

    def pack(seq):
        # Fold the 1/sqrt(head_size) attention scale into the Q columns (exact).
        qkv = jnp.concatenate([flat(params[f"wq_{seq}"]) * scale,
                               flat(params[f"wk_{seq}"]),
                               flat(params[f"wv_{seq}"])], axis=-1)   # (E, 3*Hhs)
        return jnp.concatenate([pad_cols(qkv),
                                pad_cols(params[f"wp_{seq}"]),        # (Hhs, E)
                                pad_cols(params[f"bp_{seq}"])],       # (1, E)
                               axis=0)                                # (E+Hhs+1, C)

    slab = jnp.stack([pack("head"), pack("body")], axis=0)  # (2, E+Hhs+1, C)
    return {"num_heads": H, "head_size": hs, "slab": slab}


def multi_head_ca_attention(x_head, x_body, fused):
    B, T, E = x_head.shape
    kernel = functools.partial(_fused_ca_kernel,
                               num_heads=fused["num_heads"],
                               head_size=fused["head_size"])
    # Single invocation (no grid): all operands are whole-array VMEM blocks,
    # so there is no per-step pipeline overhead and only 3 input DMAs total.
    return pl.pallas_call(
        kernel,
        out_shape=(jax.ShapeDtypeStruct((B, T, E), x_head.dtype),
                   jax.ShapeDtypeStruct((B, T, E), x_body.dtype)),
    )(x_head, x_body, fused["slab"])


# ----------------------------- reference ----------------------------------- #

def _reference(x_head, x_body, params):
    hs = params["wq_head"].shape[-1]
    scale = hs ** (-0.5)
    outs_h, outs_b = [], []
    for h in range(params["wq_head"].shape[0]):
        qh = x_head @ params["wq_head"][h]
        kh = x_head @ params["wk_head"][h]
        vh = x_head @ params["wv_head"][h]
        qb = x_body @ params["wq_body"][h]
        kb = x_body @ params["wk_body"][h]
        vb = x_body @ params["wv_body"][h]
        ah = jax.nn.softmax(qh @ jnp.swapaxes(kb, -2, -1) * scale, axis=-1)
        ab = jax.nn.softmax(qb @ jnp.swapaxes(kh, -2, -1) * scale, axis=-1)
        outs_h.append(ah @ vb)
        outs_b.append(ab @ vh)
    oh = jnp.concatenate(outs_h, axis=-1)
    ob = jnp.concatenate(outs_b, axis=-1)
    out_head = oh @ params["wp_head"] + params["bp_head"][0]
    out_body = ob @ params["wp_body"] + params["bp_body"][0]
    return out_head, out_body


# ------------------------------- main --------------------------------------- #

if __name__ == "__main__":
    # Small shapes consistent with the module: B=2, T=8, n_embd=32,
    # num_heads=4, head_size=8 (num_heads * head_size == n_embd).
    B, T, n_embd = 2, 8, 32
    num_heads, head_size = 4, 8

    key = jax.random.PRNGKey(0)
    ks = jax.random.split(key, 12)

    def w(k, shape, scale=0.02):
        return (scale * jax.random.normal(k, shape)).astype(jnp.float32)

    params = {
        "wq_head": w(ks[0], (num_heads, n_embd, head_size)),
        "wk_head": w(ks[1], (num_heads, n_embd, head_size)),
        "wv_head": w(ks[2], (num_heads, n_embd, head_size)),
        "wq_body": w(ks[3], (num_heads, n_embd, head_size)),
        "wk_body": w(ks[4], (num_heads, n_embd, head_size)),
        "wv_body": w(ks[5], (num_heads, n_embd, head_size)),
        "wp_head": w(ks[6], (num_heads * head_size, n_embd)),
        "bp_head": w(ks[7], (1, n_embd)),
        "wp_body": w(ks[8], (num_heads * head_size, n_embd)),
        "bp_body": w(ks[9], (1, n_embd)),
    }

    x_head = jax.random.normal(ks[10], (B, T, n_embd), dtype=jnp.float32)
    x_body = jax.random.normal(ks[11], (B, T, n_embd), dtype=jnp.float32)

    fused = prepare_fused_params(params)

    out_head, out_body = multi_head_ca_attention(x_head, x_body, fused)
    jax.block_until_ready((out_head, out_body))

    ref_head, ref_body = _reference(x_head, x_body, params)
    # Slightly relaxed rtol to account for the EUP approximate reciprocal in
    # the softmax denominator; the rest of the f32 math is exact up to
    # reassociation (scale folded into the Q weights, per-head projection sum).
    np.testing.assert_allclose(np.asarray(out_head), np.asarray(ref_head),
                               rtol=1e-3, atol=2e-5)
    np.testing.assert_allclose(np.asarray(out_body), np.asarray(ref_body),
                               rtol=1e-3, atol=2e-5)

    print("KERNEL_OK")
</pallas_src>

<mosaic_0001>
module attributes {stable_mosaic.version = 11 : i64} {
  func.func @_fused_ca_kernel(%arg0: memref<2x8x32xf32, #tpu.memory_space<vmem>>, %arg1: memref<2x8x32xf32, #tpu.memory_space<vmem>>, %arg2: memref<2x65x96xf32, #tpu.memory_space<vmem>>, %arg3: memref<2x8x32xf32, #tpu.memory_space<vmem>>, %arg4: memref<2x8x32xf32, #tpu.memory_space<vmem>>) attributes {dimension_semantics = [], scalar_prefetch = 0 : i64, scratch_operands = 0 : i64, tpu.core_type = #tpu.core_type<tc>} {
    %c0 = arith.constant 0 : index
    %c0_0 = arith.constant 0 : index
    %c0_1 = arith.constant 0 : index
    %0 = vector.load %arg2[%c0, %c0_0, %c0_1] : memref<2x65x96xf32, #tpu.memory_space<vmem>>, vector<1x65x96xf32>
    %1 = vector.shape_cast %0 : vector<1x65x96xf32> to vector<65x96xf32>
    %c1 = arith.constant 1 : index
    %c0_2 = arith.constant 0 : index
    %c0_3 = arith.constant 0 : index
    %2 = vector.load %arg2[%c1, %c0_2, %c0_3] : memref<2x65x96xf32, #tpu.memory_space<vmem>>, vector<1x65x96xf32>
    %3 = vector.shape_cast %2 : vector<1x65x96xf32> to vector<65x96xf32>
    %4 = vector.extract_strided_slice %1 {offsets = [0, 0], sizes = [32, 96], strides = [1, 1]} : vector<65x96xf32> to vector<32x96xf32>
    %5 = vector.extract_strided_slice %3 {offsets = [0, 0], sizes = [32, 96], strides = [1, 1]} : vector<65x96xf32> to vector<32x96xf32>
    %6 = vector.extract_strided_slice %1 {offsets = [32, 0], sizes = [32, 32], strides = [1, 1]} : vector<65x96xf32> to vector<32x32xf32>
    %7 = vector.extract_strided_slice %3 {offsets = [32, 0], sizes = [32, 32], strides = [1, 1]} : vector<65x96xf32> to vector<32x32xf32>
    %8 = vector.extract_strided_slice %1 {offsets = [64, 0], sizes = [1, 32], strides = [1, 1]} : vector<65x96xf32> to vector<1x32xf32>
    %9 = vector.extract_strided_slice %3 {offsets = [64, 0], sizes = [1, 32], strides = [1, 1]} : vector<65x96xf32> to vector<1x32xf32>
    %c0_4 = arith.constant 0 : index
    %c0_5 = arith.constant 0 : index
    %c0_6 = arith.constant 0 : index
    %10 = vector.load %arg0[%c0_4, %c0_5, %c0_6] : memref<2x8x32xf32, #tpu.memory_space<vmem>>, vector<2x8x32xf32>
    %11 = vector.shape_cast %10 : vector<2x8x32xf32> to vector<16x32xf32>
    %c0_7 = arith.constant 0 : index
    %c0_8 = arith.constant 0 : index
    %c0_9 = arith.constant 0 : index
    %12 = vector.load %arg1[%c0_7, %c0_8, %c0_9] : memref<2x8x32xf32, #tpu.memory_space<vmem>>, vector<2x8x32xf32>
    %13 = vector.shape_cast %12 : vector<2x8x32xf32> to vector<16x32xf32>
    %cst = arith.constant dense<0.000000e+00> : vector<16x96xf32>
    %14 = tpu.matmul %11, %4, %cst {dimension_numbers = #tpu.dot_dimension_numbers<[1], [0], [0], [1], [0, 0, 1, 1], [], []>} : vector<16x32xf32>, vector<32x96xf32>, vector<16x96xf32> -> vector<16x96xf32>
    %cst_10 = arith.constant dense<0.000000e+00> : vector<16x96xf32>
    %15 = tpu.matmul %13, %5, %cst_10 {dimension_numbers = #tpu.dot_dimension_numbers<[1], [0], [0], [1], [0, 0, 1, 1], [], []>} : vector<16x32xf32>, vector<32x96xf32>, vector<16x96xf32> -> vector<16x96xf32>
    %16 = vector.shape_cast %8 : vector<1x32xf32> to vector<1x32xf32>
    %17 = vector.broadcast %16 : vector<1x32xf32> to vector<8x32xf32>
    %18 = vector.shape_cast %9 : vector<1x32xf32> to vector<1x32xf32>
    %19 = vector.broadcast %18 : vector<1x32xf32> to vector<8x32xf32>
    %20 = vector.extract_strided_slice %6 {offsets = [0, 0], sizes = [8, 32], strides = [1, 1]} : vector<32x32xf32> to vector<8x32xf32>
    %21 = vector.extract_strided_slice %7 {offsets = [0, 0], sizes = [8, 32], strides = [1, 1]} : vector<32x32xf32> to vector<8x32xf32>
    %22 = vector.extract_strided_slice %14 {offsets = [0, 0], sizes = [8, 8], strides = [1, 1]} : vector<16x96xf32> to vector<8x8xf32>
    %23 = vector.extract_strided_slice %15 {offsets = [0, 32], sizes = [8, 8], strides = [1, 1]} : vector<16x96xf32> to vector<8x8xf32>
    %24 = vector.extract_strided_slice %15 {offsets = [0, 64], sizes = [8, 8], strides = [1, 1]} : vector<16x96xf32> to vector<8x8xf32>
    %cst_11 = arith.constant dense<0.000000e+00> : vector<8x8xf32>
    %25 = tpu.matmul %22, %23, %cst_11 {dimension_numbers = #tpu.dot_dimension_numbers<[1], [1], [0], [0], [0, 0, 1, 0], [], []>} : vector<8x8xf32>, vector<8x8xf32>, vector<8x8xf32> -> vector<8x8xf32>
    %cst_12 = arith.constant dense<0xFF800000> : vector<8xf32>
    %26 = vector.multi_reduction <maximumf>, %25, %cst_12 [1] : vector<8x8xf32> to vector<8xf32>
    %27 = vector.shape_cast %26 : vector<8xf32> to vector<8x1xf32>
    %28 = vector.broadcast %27 : vector<8x1xf32> to vector<8x8xf32>
    %29 = arith.subf %25, %28 : vector<8x8xf32>
    %30 = math.exp %29 : vector<8x8xf32>
    %cst_13 = arith.constant dense<0.000000e+00> : vector<8xf32>
    %31 = vector.multi_reduction <add>, %30, %cst_13 [1] : vector<8x8xf32> to vector<8xf32>
    %32 = vector.shape_cast %31 : vector<8xf32> to vector<8x1xf32>
    %33 = tpu.reciprocal %32 {approx = true} : vector<8x1xf32> -> vector<8x1xf32>
    %cst_14 = arith.constant dense<0.000000e+00> : vector<8x8xf32>
    %34 = tpu.matmul %30, %24, %cst_14 {dimension_numbers = #tpu.dot_dimension_numbers<[1], [0], [0], [1], [0, 0, 1, 1], [], []>} : vector<8x8xf32>, vector<8x8xf32>, vector<8x8xf32> -> vector<8x8xf32>
    %35 = vector.broadcast %33 : vector<8x1xf32> to vector<8x8xf32>
    %36 = arith.mulf %34, %35 : vector<8x8xf32>
    %37 = vector.extract_strided_slice %15 {offsets = [0, 0], sizes = [8, 8], strides = [1, 1]} : vector<16x96xf32> to vector<8x8xf32>
    %38 = vector.extract_strided_slice %14 {offsets = [0, 32], sizes = [8, 8], strides = [1, 1]} : vector<16x96xf32> to vector<8x8xf32>
    %39 = vector.extract_strided_slice %14 {offsets = [0, 64], sizes = [8, 8], strides = [1, 1]} : vector<16x96xf32> to vector<8x8xf32>
    %cst_15 = arith.constant dense<0.000000e+00> : vector<8x8xf32>
    %40 = tpu.matmul %37, %38, %cst_15 {dimension_numbers = #tpu.dot_dimension_numbers<[1], [1], [0], [0], [0, 0, 1, 0], [], []>} : vector<8x8xf32>, vector<8x8xf32>, vector<8x8xf32> -> vector<8x8xf32>
    %cst_16 = arith.constant dense<0xFF800000> : vector<8xf32>
    %41 = vector.multi_reduction <maximumf>, %40, %cst_16 [1] : vector<8x8xf32> to vector<8xf32>
    %42 = vector.shape_cast %41 : vector<8xf32> to vector<8x1xf32>
    %43 = vector.broadcast %42 : vector<8x1xf32> to vector<8x8xf32>
    %44 = arith.subf %40, %43 : vector<8x8xf32>
    %45 = math.exp %44 : vector<8x8xf32>
    %cst_17 = arith.constant dense<0.000000e+00> : vector<8xf32>
    %46 = vector.multi_reduction <add>, %45, %cst_17 [1] : vector<8x8xf32> to vector<8xf32>
    %47 = vector.shape_cast %46 : vector<8xf32> to vector<8x1xf32>
    %48 = tpu.reciprocal %47 {approx = true} : vector<8x1xf32> -> vector<8x1xf32>
    %cst_18 = arith.constant dense<0.000000e+00> : vector<8x8xf32>
    %49 = tpu.matmul %45, %39, %cst_18 {dimension_numbers = #tpu.dot_dimension_numbers<[1], [0], [0], [1], [0, 0, 1, 1], [], []>} : vector<8x8xf32>, vector<8x8xf32>, vector<8x8xf32> -> vector<8x8xf32>
    %50 = vector.broadcast %48 : vector<8x1xf32> to vector<8x8xf32>
    %51 = arith.mulf %49, %50 : vector<8x8xf32>
    %cst_19 = arith.constant dense<0.000000e+00> : vector<8x32xf32>
    %52 = tpu.matmul %36, %20, %cst_19 {dimension_numbers = #tpu.dot_dimension_numbers<[1], [0], [0], [1], [0, 0, 1, 1], [], []>} : vector<8x8xf32>, vector<8x32xf32>, vector<8x32xf32> -> vector<8x32xf32>
    %53 = arith.addf %17, %52 : vector<8x32xf32>
    %cst_20 = arith.constant dense<0.000000e+00> : vector<8x32xf32>
    %54 = tpu.matmul %51, %21, %cst_20 {dimension_numbers = #tpu.dot_dimension_numbers<[1], [0], [0], [1], [0, 0, 1, 1], [], []>} : vector<8x8xf32>, vector<8x32xf32>, vector<8x32xf32> -> vector<8x32xf32>
    %55 = arith.addf %19, %54 : vector<8x32xf32>
    %56 = vector.extract_strided_slice %14 {offsets = [8, 0], sizes = [8, 8], strides = [1, 1]} : vector<16x96xf32> to vector<8x8xf32>
    %57 = vector.extract_strided_slice %15 {offsets = [8, 32], sizes = [8, 8], strides = [1, 1]} : vector<16x96xf32> to vector<8x8xf32>
    %58 = vector.extract_strided_slice %15 {offsets = [8, 64], sizes = [8, 8], strides = [1, 1]} : vector<16x96xf32> to vector<8x8xf32>
    %cst_21 = arith.constant dense<0.000000e+00> : vector<8x8xf32>
    %59 = tpu.matmul %56, %57, %cst_21 {dimension_numbers = #tpu.dot_dimension_numbers<[1], [1], [0], [0], [0, 0, 1, 0], [], []>} : vector<8x8xf32>, vector<8x8xf32>, vector<8x8xf32> -> vector<8x8xf32>
    %cst_22 = arith.constant dense<0xFF800000> : vector<8xf32>
    %60 = vector.multi_reduction <maximumf>, %59, %cst_22 [1] : vector<8x8xf32> to vector<8xf32>
    %61 = vector.shape_cast %60 : vector<8xf32> to vector<8x1xf32>
    %62 = vector.broadcast %61 : vector<8x1xf32> to vector<8x8xf32>
    %63 = arith.subf %59, %62 : vector<8x8xf32>
    %64 = math.exp %63 : vector<8x8xf32>
    %cst_23 = arith.constant dense<0.000000e+00> : vector<8xf32>
    %65 = vector.multi_reduction <add>, %64, %cst_23 [1] : vector<8x8xf32> to vector<8xf32>
    %66 = vector.shape_cast %65 : vector<8xf32> to vector<8x1xf32>
    %67 = tpu.reciprocal %66 {approx = true} : vector<8x1xf32> -> vector<8x1xf32>
    %cst_24 = arith.constant dense<0.000000e+00> : vector<8x8xf32>
    %68 = tpu.matmul %64, %58, %cst_24 {dimension_numbers = #tpu.dot_dimension_numbers<[1], [0], [0], [1], [0, 0, 1, 1], [], []>} : vector<8x8xf32>, vector<8x8xf32>, vector<8x8xf32> -> vector<8x8xf32>
    %69 = vector.broadcast %67 : vector<8x1xf32> to vector<8x8xf32>
    %70 = arith.mulf %68, %69 : vector<8x8xf32>
    %71 = vector.extract_strided_slice %15 {offsets = [8, 0], sizes = [8, 8], strides = [1, 1]} : vector<16x96xf32> to vector<8x8xf32>
    %72 = vector.extract_strided_slice %14 {offsets = [8, 32], sizes = [8, 8], strides = [1, 1]} : vector<16x96xf32> to vector<8x8xf32>
    %73 = vector.extract_strided_slice %14 {offsets = [8, 64], sizes = [8, 8], strides = [1, 1]} : vector<16x96xf32> to vector<8x8xf32>
    %cst_25 = arith.constant dense<0.000000e+00> : vector<8x8xf32>
    %74 = tpu.matmul %71, %72, %cst_25 {dimension_numbers = #tpu.dot_dimension_numbers<[1], [1], [0], [0], [0, 0, 1, 0], [], []>} : vector<8x8xf32>, vector<8x8xf32>, vector<8x8xf32> -> vector<8x8xf32>
    %cst_26 = arith.constant dense<0xFF800000> : vector<8xf32>
    %75 = vector.multi_reduction <maximumf>, %74, %cst_26 [1] : vector<8x8xf32> to vector<8xf32>
    %76 = vector.shape_cast %75 : vector<8xf32> to vector<8x1xf32>
    %77 = vector.broadcast %76 : vector<8x1xf32> to vector<8x8xf32>
    %78 = arith.subf %74, %77 : vector<8x8xf32>
    %79 = math.exp %78 : vector<8x8xf32>
    %cst_27 = arith.constant dense<0.000000e+00> : vector<8xf32>
    %80 = vector.multi_reduction <add>, %79, %cst_27 [1] : vector<8x8xf32> to vector<8xf32>
    %81 = vector.shape_cast %80 : vector<8xf32> to vector<8x1xf32>
    %82 = tpu.reciprocal %81 {approx = true} : vector<8x1xf32> -> vector<8x1xf32>
    %cst_28 = arith.constant dense<0.000000e+00> : vector<8x8xf32>
    %83 = tpu.matmul %79, %73, %cst_28 {dimension_numbers = #tpu.dot_dimension_numbers<[1], [0], [0], [1], [0, 0, 1, 1], [], []>} : vector<8x8xf32>, vector<8x8xf32>, vector<8x8xf32> -> vector<8x8xf32>
    %84 = vector.broadcast %82 : vector<8x1xf32> to vector<8x8xf32>
    %85 = arith.mulf %83, %84 : vector<8x8xf32>
    %cst_29 = arith.constant dense<0.000000e+00> : vector<8x32xf32>
    %86 = tpu.matmul %70, %20, %cst_29 {dimension_numbers = #tpu.dot_dimension_numbers<[1], [0], [0], [1], [0, 0, 1, 1], [], []>} : vector<8x8xf32>, vector<8x32xf32>, vector<8x32xf32> -> vector<8x32xf32>
    %87 = arith.addf %17, %86 : vector<8x32xf32>
    %cst_30 = arith.constant dense<0.000000e+00> : vector<8x32xf32>
    %88 = tpu.matmul %85, %21, %cst_30 {dimension_numbers = #tpu.dot_dimension_numbers<[1], [0], [0], [1], [0, 0, 1, 1], [], []>} : vector<8x8xf32>, vector<8x32xf32>, vector<8x32xf32> -> vector<8x32xf32>
    %89 = arith.addf %19, %88 : vector<8x32xf32>
    %90 = vector.extract_strided_slice %6 {offsets = [8, 0], sizes = [8, 32], strides = [1, 1]} : vector<32x32xf32> to vector<8x32xf32>
    %91 = vector.extract_strided_slice %7 {offsets = [8, 0], sizes = [8, 32], strides = [1, 1]} : vector<32x32xf32> to vector<8x32xf32>
    %92 = vector.extract_strided_slice %14 {offsets = [0, 8], sizes = [8, 8], strides = [1, 1]} : vector<16x96xf32> to vector<8x8xf32>
    %93 = vector.extract_strided_slice %15 {offsets = [0, 40], sizes = [8, 8], strides = [1, 1]} : vector<16x96xf32> to vector<8x8xf32>
    %94 = vector.extract_strided_slice %15 {offsets = [0, 72], sizes = [8, 8], strides = [1, 1]} : vector<16x96xf32> to vector<8x8xf32>
    %cst_31 = arith.constant dense<0.000000e+00> : vector<8x8xf32>
    %95 = tpu.matmul %92, %93, %cst_31 {dimension_numbers = #tpu.dot_dimension_numbers<[1], [1], [0], [0], [0, 0, 1, 0], [], []>} : vector<8x8xf32>, vector<8x8xf32>, vector<8x8xf32> -> vector<8x8xf32>
    %cst_32 = arith.constant dense<0xFF800000> : vector<8xf32>
    %96 = vector.multi_reduction <maximumf>, %95, %cst_32 [1] : vector<8x8xf32> to vector<8xf32>
    %97 = vector.shape_cast %96 : vector<8xf32> to vector<8x1xf32>
    %98 = vector.broadcast %97 : vector<8x1xf32> to vector<8x8xf32>
    %99 = arith.subf %95, %98 : vector<8x8xf32>
    %100 = math.exp %99 : vector<8x8xf32>
    %cst_33 = arith.constant dense<0.000000e+00> : vector<8xf32>
    %101 = vector.multi_reduction <add>, %100, %cst_33 [1] : vector<8x8xf32> to vector<8xf32>
    %102 = vector.shape_cast %101 : vector<8xf32> to vector<8x1xf32>
    %103 = tpu.reciprocal %102 {approx = true} : vector<8x1xf32> -> vector<8x1xf32>
    %cst_34 = arith.constant dense<0.000000e+00> : vector<8x8xf32>
    %104 = tpu.matmul %100, %94, %cst_34 {dimension_numbers = #tpu.dot_dimension_numbers<[1], [0], [0], [1], [0, 0, 1, 1], [], []>} : vector<8x8xf32>, vector<8x8xf32>, vector<8x8xf32> -> vector<8x8xf32>
    %105 = vector.broadcast %103 : vector<8x1xf32> to vector<8x8xf32>
    %106 = arith.mulf %104, %105 : vector<8x8xf32>
    %107 = vector.extract_strided_slice %15 {offsets = [0, 8], sizes = [8, 8], strides = [1, 1]} : vector<16x96xf32> to vector<8x8xf32>
    %108 = vector.extract_strided_slice %14 {offsets = [0, 40], sizes = [8, 8], strides = [1, 1]} : vector<16x96xf32> to vector<8x8xf32>
    %109 = vector.extract_strided_slice %14 {offsets = [0, 72], sizes = [8, 8], strides = [1, 1]} : vector<16x96xf32> to vector<8x8xf32>
    %cst_35 = arith.constant dense<0.000000e+00> : vector<8x8xf32>
    %110 = tpu.matmul %107, %108, %cst_35 {dimension_numbers = #tpu.dot_dimension_numbers<[1], [1], [0], [0], [0, 0, 1, 0], [], []>} : vector<8x8xf32>, vector<8x8xf32>, vector<8x8xf32> -> vector<8x8xf32>
    %cst_36 = arith.constant dense<0xFF800000> : vector<8xf32>
    %111 = vector.multi_reduction <maximumf>, %110, %cst_36 [1] : vector<8x8xf32> to vector<8xf32>
    %112 = vector.shape_cast %111 : vector<8xf32> to vector<8x1xf32>
    %113 = vector.broadcast %112 : vector<8x1xf32> to vector<8x8xf32>
    %114 = arith.subf %110, %113 : vector<8x8xf32>
    %115 = math.exp %114 : vector<8x8xf32>
    %cst_37 = arith.constant dense<0.000000e+00> : vector<8xf32>
    %116 = vector.multi_reduction <add>, %115, %cst_37 [1] : vector<8x8xf32> to vector<8xf32>
    %117 = vector.shape_cast %116 : vector<8xf32> to vector<8x1xf32>
    %118 = tpu.reciprocal %117 {approx = true} : vector<8x1xf32> -> vector<8x1xf32>
    %cst_38 = arith.constant dense<0.000000e+00> : vector<8x8xf32>
    %119 = tpu.matmul %115, %109, %cst_38 {dimension_numbers = #tpu.dot_dimension_numbers<[1], [0], [0], [1], [0, 0, 1, 1], [], []>} : vector<8x8xf32>, vector<8x8xf32>, vector<8x8xf32> -> vector<8x8xf32>
    %120 = vector.broadcast %118 : vector<8x1xf32> to vector<8x8xf32>
    %121 = arith.mulf %119, %120 : vector<8x8xf32>
    %cst_39 = arith.constant dense<0.000000e+00> : vector<8x32xf32>
    %122 = tpu.matmul %106, %90, %cst_39 {dimension_numbers = #tpu.dot_dimension_numbers<[1], [0], [0], [1], [0, 0, 1, 1], [], []>} : vector<8x8xf32>, vector<8x32xf32>, vector<8x32xf32> -> vector<8x32xf32>
    %123 = arith.addf %53, %122 : vector<8x32xf32>
    %cst_40 = arith.constant dense<0.000000e+00> : vector<8x32xf32>
    %124 = tpu.matmul %121, %91, %cst_40 {dimension_numbers = #tpu.dot_dimension_numbers<[1], [0], [0], [1], [0, 0, 1, 1], [], []>} : vector<8x8xf32>, vector<8x32xf32>, vector<8x32xf32> -> vector<8x32xf32>
    %125 = arith.addf %55, %124 : vector<8x32xf32>
    %126 = vector.extract_strided_slice %14 {offsets = [8, 8], sizes = [8, 8], strides = [1, 1]} : vector<16x96xf32> to vector<8x8xf32>
    %127 = vector.extract_strided_slice %15 {offsets = [8, 40], sizes = [8, 8], strides = [1, 1]} : vector<16x96xf32> to vector<8x8xf32>
    %128 = vector.extract_strided_slice %15 {offsets = [8, 72], sizes = [8, 8], strides = [1, 1]} : vector<16x96xf32> to vector<8x8xf32>
    %cst_41 = arith.constant dense<0.000000e+00> : vector<8x8xf32>
    %129 = tpu.matmul %126, %127, %cst_41 {dimension_numbers = #tpu.dot_dimension_numbers<[1], [1], [0], [0], [0, 0, 1, 0], [], []>} : vector<8x8xf32>, vector<8x8xf32>, vector<8x8xf32> -> vector<8x8xf32>
    %cst_42 = arith.constant dense<0xFF800000> : vector<8xf32>
    %130 = vector.multi_reduction <maximumf>, %129, %cst_42 [1] : vector<8x8xf32> to vector<8xf32>
    %131 = vector.shape_cast %130 : vector<8xf32> to vector<8x1xf32>
    %132 = vector.broadcast %131 : vector<8x1xf32> to vector<8x8xf32>
    %133 = arith.subf %129, %132 : vector<8x8xf32>
    %134 = math.exp %133 : vector<8x8xf32>
    %cst_43 = arith.constant dense<0.000000e+00> : vector<8xf32>
    %135 = vector.multi_reduction <add>, %134, %cst_43 [1] : vector<8x8xf32> to vector<8xf32>
    %136 = vector.shape_cast %135 : vector<8xf32> to vector<8x1xf32>
    %137 = tpu.reciprocal %136 {approx = true} : vector<8x1xf32> -> vector<8x1xf32>
    %cst_44 = arith.constant dense<0.000000e+00> : vector<8x8xf32>
    %138 = tpu.matmul %134, %128, %cst_44 {dimension_numbers = #tpu.dot_dimension_numbers<[1], [0], [0], [1], [0, 0, 1, 1], [], []>} : vector<8x8xf32>, vector<8x8xf32>, vector<8x8xf32> -> vector<8x8xf32>
    %139 = vector.broadcast %137 : vector<8x1xf32> to vector<8x8xf32>
    %140 = arith.mulf %138, %139 : vector<8x8xf32>
    %141 = vector.extract_strided_slice %15 {offsets = [8, 8], sizes = [8, 8], strides = [1, 1]} : vector<16x96xf32> to vector<8x8xf32>
    %142 = vector.extract_strided_slice %14 {offsets = [8, 40], sizes = [8, 8], strides = [1, 1]} : vector<16x96xf32> to vector<8x8xf32>
    %143 = vector.extract_strided_slice %14 {offsets = [8, 72], sizes = [8, 8], strides = [1, 1]} : vector<16x96xf32> to vector<8x8xf32>
    %cst_45 = arith.constant dense<0.000000e+00> : vector<8x8xf32>
    %144 = tpu.matmul %141, %142, %cst_45 {dimension_numbers = #tpu.dot_dimension_numbers<[1], [1], [0], [0], [0, 0, 1, 0], [], []>} : vector<8x8xf32>, vector<8x8xf32>, vector<8x8xf32> -> vector<8x8xf32>
    %cst_46 = arith.constant dense<0xFF800000> : vector<8xf32>
    %145 = vector.multi_reduction <maximumf>, %144, %cst_46 [1] : vector<8x8xf32> to vector<8xf32>
    %146 = vector.shape_cast %145 : vector<8xf32> to vector<8x1xf32>
    %147 = vector.broadcast %146 : vector<8x1xf32> to vector<8x8xf32>
    %148 = arith.subf %144, %147 : vector<8x8xf32>
    %149 = math.exp %148 : vector<8x8xf32>
    %cst_47 = arith.constant dense<0.000000e+00> : vector<8xf32>
    %150 = vector.multi_reduction <add>, %149, %cst_47 [1] : vector<8x8xf32> to vector<8xf32>
    %151 = vector.shape_cast %150 : vector<8xf32> to vector<8x1xf32>
    %152 = tpu.reciprocal %151 {approx = true} : vector<8x1xf32> -> vector<8x1xf32>
    %cst_48 = arith.constant dense<0.000000e+00> : vector<8x8xf32>
    %153 = tpu.matmul %149, %143, %cst_48 {dimension_numbers = #tpu.dot_dimension_numbers<[1], [0], [0], [1], [0, 0, 1, 1], [], []>} : vector<8x8xf32>, vector<8x8xf32>, vector<8x8xf32> -> vector<8x8xf32>
    %154 = vector.broadcast %152 : vector<8x1xf32> to vector<8x8xf32>
    %155 = arith.mulf %153, %154 : vector<8x8xf32>
    %cst_49 = arith.constant dense<0.000000e+00> : vector<8x32xf32>
    %156 = tpu.matmul %140, %90, %cst_49 {dimension_numbers = #tpu.dot_dimension_numbers<[1], [0], [0], [1], [0, 0, 1, 1], [], []>} : vector<8x8xf32>, vector<8x32xf32>, vector<8x32xf32> -> vector<8x32xf32>
    %157 = arith.addf %87, %156 : vector<8x32xf32>
    %cst_50 = arith.constant dense<0.000000e+00> : vector<8x32xf32>
    %158 = tpu.matmul %155, %91, %cst_50 {dimension_numbers = #tpu.dot_dimension_numbers<[1], [0], [0], [1], [0, 0, 1, 1], [], []>} : vector<8x8xf32>, vector<8x32xf32>, vector<8x32xf32> -> vector<8x32xf32>
    %159 = arith.addf %89, %158 : vector<8x32xf32>
    %160 = vector.extract_strided_slice %6 {offsets = [16, 0], sizes = [8, 32], strides = [1, 1]} : vector<32x32xf32> to vector<8x32xf32>
    %161 = vector.extract_strided_slice %7 {offsets = [16, 0], sizes = [8, 32], strides = [1, 1]} : vector<32x32xf32> to vector<8x32xf32>
    %162 = vector.extract_strided_slice %14 {offsets = [0, 16], sizes = [8, 8], strides = [1, 1]} : vector<16x96xf32> to vector<8x8xf32>
    %163 = vector.extract_strided_slice %15 {offsets = [0, 48], sizes = [8, 8], strides = [1, 1]} : vector<16x96xf32> to vector<8x8xf32>
    %164 = vector.extract_strided_slice %15 {offsets = [0, 80], sizes = [8, 8], strides = [1, 1]} : vector<16x96xf32> to vector<8x8xf32>
    %cst_51 = arith.constant dense<0.000000e+00> : vector<8x8xf32>
    %165 = tpu.matmul %162, %163, %cst_51 {dimension_numbers = #tpu.dot_dimension_numbers<[1], [1], [0], [0], [0, 0, 1, 0], [], []>} : vector<8x8xf32>, vector<8x8xf32>, vector<8x8xf32> -> vector<8x8xf32>
    %cst_52 = arith.constant dense<0xFF800000> : vector<8xf32>
    %166 = vector.multi_reduction <maximumf>, %165, %cst_52 [1] : vector<8x8xf32> to vector<8xf32>
    %167 = vector.shape_cast %166 : vector<8xf32> to vector<8x1xf32>
    %168 = vector.broadcast %167 : vector<8x1xf32> to vector<8x8xf32>
    %169 = arith.subf %165, %168 : vector<8x8xf32>
    %170 = math.exp %169 : vector<8x8xf32>
    %cst_53 = arith.constant dense<0.000000e+00> : vector<8xf32>
    %171 = vector.multi_reduction <add>, %170, %cst_53 [1] : vector<8x8xf32> to vector<8xf32>
    %172 = vector.shape_cast %171 : vector<8xf32> to vector<8x1xf32>
    %173 = tpu.reciprocal %172 {approx = true} : vector<8x1xf32> -> vector<8x1xf32>
    %cst_54 = arith.constant dense<0.000000e+00> : vector<8x8xf32>
    %174 = tpu.matmul %170, %164, %cst_54 {dimension_numbers = #tpu.dot_dimension_numbers<[1], [0], [0], [1], [0, 0, 1, 1], [], []>} : vector<8x8xf32>, vector<8x8xf32>, vector<8x8xf32> -> vector<8x8xf32>
    %175 = vector.broadcast %173 : vector<8x1xf32> to vector<8x8xf32>
    %176 = arith.mulf %174, %175 : vector<8x8xf32>
    %177 = vector.extract_strided_slice %15 {offsets = [0, 16], sizes = [8, 8], strides = [1, 1]} : vector<16x96xf32> to vector<8x8xf32>
    %178 = vector.extract_strided_slice %14 {offsets = [0, 48], sizes = [8, 8], strides = [1, 1]} : vector<16x96xf32> to vector<8x8xf32>
    %179 = vector.extract_strided_slice %14 {offsets = [0, 80], sizes = [8, 8], strides = [1, 1]} : vector<16x96xf32> to vector<8x8xf32>
    %cst_55 = arith.constant dense<0.000000e+00> : vector<8x8xf32>
    %180 = tpu.matmul %177, %178, %cst_55 {dimension_numbers = #tpu.dot_dimension_numbers<[1], [1], [0], [0], [0, 0, 1, 0], [], []>} : vector<8x8xf32>, vector<8x8xf32>, vector<8x8xf32> -> vector<8x8xf32>
    %cst_56 = arith.constant dense<0xFF800000> : vector<8xf32>
    %181 = vector.multi_reduction <maximumf>, %180, %cst_56 [1] : vector<8x8xf32> to vector<8xf32>
    %182 = vector.shape_cast %181 : vector<8xf32> to vector<8x1xf32>
    %183 = vector.broadcast %182 : vector<8x1xf32> to vector<8x8xf32>
    %184 = arith.subf %180, %183 : vector<8x8xf32>
    %185 = math.exp %184 : vector<8x8xf32>
    %cst_57 = arith.constant dense<0.000000e+00> : vector<8xf32>
    %186 = vector.multi_reduction <add>, %185, %cst_57 [1] : vector<8x8xf32> to vector<8xf32>
    %187 = vector.shape_cast %186 : vector<8xf32> to vector<8x1xf32>
    %188 = tpu.reciprocal %187 {approx = true} : vector<8x1xf32> -> vector<8x1xf32>
    %cst_58 = arith.constant dense<0.000000e+00> : vector<8x8xf32>
    %189 = tpu.matmul %185, %179, %cst_58 {dimension_numbers = #tpu.dot_dimension_numbers<[1], [0], [0], [1], [0, 0, 1, 1], [], []>} : vector<8x8xf32>, vector<8x8xf32>, vector<8x8xf32> -> vector<8x8xf32>
    %190 = vector.broadcast %188 : vector<8x1xf32> to vector<8x8xf32>
    %191 = arith.mulf %189, %190 : vector<8x8xf32>
    %cst_59 = arith.constant dense<0.000000e+00> : vector<8x32xf32>
    %192 = tpu.matmul %176, %160, %cst_59 {dimension_numbers = #tpu.dot_dimension_numbers<[1], [0], [0], [1], [0, 0, 1, 1], [], []>} : vector<8x8xf32>, vector<8x32xf32>, vector<8x32xf32> -> vector<8x32xf32>
    %193 = arith.addf %123, %192 : vector<8x32xf32>
    %cst_60 = arith.constant dense<0.000000e+00> : vector<8x32xf32>
    %194 = tpu.matmul %191, %161, %cst_60 {dimension_numbers = #tpu.dot_dimension_numbers<[1], [0], [0], [1], [0, 0, 1, 1], [], []>} : vector<8x8xf32>, vector<8x32xf32>, vector<8x32xf32> -> vector<8x32xf32>
    %195 = arith.addf %125, %194 : vector<8x32xf32>
    %196 = vector.extract_strided_slice %14 {offsets = [8, 16], sizes = [8, 8], strides = [1, 1]} : vector<16x96xf32> to vector<8x8xf32>
    %197 = vector.extract_strided_slice %15 {offsets = [8, 48], sizes = [8, 8], strides = [1, 1]} : vector<16x96xf32> to vector<8x8xf32>
    %198 = vector.extract_strided_slice %15 {offsets = [8, 80], sizes = [8, 8], strides = [1, 1]} : vector<16x96xf32> to vector<8x8xf32>
    %cst_61 = arith.constant dense<0.000000e+00> : vector<8x8xf32>
    %199 = tpu.matmul %196, %197, %cst_61 {dimension_numbers = #tpu.dot_dimension_numbers<[1], [1], [0], [0], [0, 0, 1, 0], [], []>} : vector<8x8xf32>, vector<8x8xf32>, vector<8x8xf32> -> vector<8x8xf32>
    %cst_62 = arith.constant dense<0xFF800000> : vector<8xf32>
    %200 = vector.multi_reduction <maximumf>, %199, %cst_62 [1] : vector<8x8xf32> to vector<8xf32>
    %201 = vector.shape_cast %200 : vector<8xf32> to vector<8x1xf32>
    %202 = vector.broadcast %201 : vector<8x1xf32> to vector<8x8xf32>
    %203 = arith.subf %199, %202 : vector<8x8xf32>
    %204 = math.exp %203 : vector<8x8xf32>
    %cst_63 = arith.constant dense<0.000000e+00> : vector<8xf32>
    %205 = vector.multi_reduction <add>, %204, %cst_63 [1] : vector<8x8xf32> to vector<8xf32>
    %206 = vector.shape_cast %205 : vector<8xf32> to vector<8x1xf32>
    %207 = tpu.reciprocal %206 {approx = true} : vector<8x1xf32> -> vector<8x1xf32>
    %cst_64 = arith.constant dense<0.000000e+00> : vector<8x8xf32>
    %208 = tpu.matmul %204, %198, %cst_64 {dimension_numbers = #tpu.dot_dimension_numbers<[1], [0], [0], [1], [0, 0, 1, 1], [], []>} : vector<8x8xf32>, vector<8x8xf32>, vector<8x8xf32> -> vector<8x8xf32>
    %209 = vector.broadcast %207 : vector<8x1xf32> to vector<8x8xf32>
    %210 = arith.mulf %208, %209 : vector<8x8xf32>
    %211 = vector.extract_strided_slice %15 {offsets = [8, 16], sizes = [8, 8], strides = [1, 1]} : vector<16x96xf32> to vector<8x8xf32>
    %212 = vector.extract_strided_slice %14 {offsets = [8, 48], sizes = [8, 8], strides = [1, 1]} : vector<16x96xf32> to vector<8x8xf32>
    %213 = vector.extract_strided_slice %14 {offsets = [8, 80], sizes = [8, 8], strides = [1, 1]} : vector<16x96xf32> to vector<8x8xf32>
    %cst_65 = arith.constant dense<0.000000e+00> : vector<8x8xf32>
    %214 = tpu.matmul %211, %212, %cst_65 {dimension_numbers = #tpu.dot_dimension_numbers<[1], [1], [0], [0], [0, 0, 1, 0], [], []>} : vector<8x8xf32>, vector<8x8xf32>, vector<8x8xf32> -> vector<8x8xf32>
    %cst_66 = arith.constant dense<0xFF800000> : vector<8xf32>
    %215 = vector.multi_reduction <maximumf>, %214, %cst_66 [1] : vector<8x8xf32> to vector<8xf32>
    %216 = vector.shape_cast %215 : vector<8xf32> to vector<8x1xf32>
    %217 = vector.broadcast %216 : vector<8x1xf32> to vector<8x8xf32>
    %218 = arith.subf %214, %217 : vector<8x8xf32>
    %219 = math.exp %218 : vector<8x8xf32>
    %cst_67 = arith.constant dense<0.000000e+00> : vector<8xf32>
    %220 = vector.multi_reduction <add>, %219, %cst_67 [1] : vector<8x8xf32> to vector<8xf32>
    %221 = vector.shape_cast %220 : vector<8xf32> to vector<8x1xf32>
    %222 = tpu.reciprocal %221 {approx = true} : vector<8x1xf32> -> vector<8x1xf32>
    %cst_68 = arith.constant dense<0.000000e+00> : vector<8x8xf32>
    %223 = tpu.matmul %219, %213, %cst_68 {dimension_numbers = #tpu.dot_dimension_numbers<[1], [0], [0], [1], [0, 0, 1, 1], [], []>} : vector<8x8xf32>, vector<8x8xf32>, vector<8x8xf32> -> vector<8x8xf32>
    %224 = vector.broadcast %222 : vector<8x1xf32> to vector<8x8xf32>
    %225 = arith.mulf %223, %224 : vector<8x8xf32>
    %cst_69 = arith.constant dense<0.000000e+00> : vector<8x32xf32>
    %226 = tpu.matmul %210, %160, %cst_69 {dimension_numbers = #tpu.dot_dimension_numbers<[1], [0], [0], [1], [0, 0, 1, 1], [], []>} : vector<8x8xf32>, vector<8x32xf32>, vector<8x32xf32> -> vector<8x32xf32>
    %227 = arith.addf %157, %226 : vector<8x32xf32>
    %cst_70 = arith.constant dense<0.000000e+00> : vector<8x32xf32>
    %228 = tpu.matmul %225, %161, %cst_70 {dimension_numbers = #tpu.dot_dimension_numbers<[1], [0], [0], [1], [0, 0, 1, 1], [], []>} : vector<8x8xf32>, vector<8x32xf32>, vector<8x32xf32> -> vector<8x32xf32>
    %229 = arith.addf %159, %228 : vector<8x32xf32>
    %230 = vector.extract_strided_slice %6 {offsets = [24, 0], sizes = [8, 32], strides = [1, 1]} : vector<32x32xf32> to vector<8x32xf32>
    %231 = vector.extract_strided_slice %7 {offsets = [24, 0], sizes = [8, 32], strides = [1, 1]} : vector<32x32xf32> to vector<8x32xf32>
    %232 = vector.extract_strided_slice %14 {offsets = [0, 24], sizes = [8, 8], strides = [1, 1]} : vector<16x96xf32> to vector<8x8xf32>
    %233 = vector.extract_strided_slice %15 {offsets = [0, 56], sizes = [8, 8], strides = [1, 1]} : vector<16x96xf32> to vector<8x8xf32>
    %234 = vector.extract_strided_slice %15 {offsets = [0, 88], sizes = [8, 8], strides = [1, 1]} : vector<16x96xf32> to vector<8x8xf32>
    %cst_71 = arith.constant dense<0.000000e+00> : vector<8x8xf32>
    %235 = tpu.matmul %232, %233, %cst_71 {dimension_numbers = #tpu.dot_dimension_numbers<[1], [1], [0], [0], [0, 0, 1, 0], [], []>} : vector<8x8xf32>, vector<8x8xf32>, vector<8x8xf32> -> vector<8x8xf32>
    %cst_72 = arith.constant dense<0xFF800000> : vector<8xf32>
    %236 = vector.multi_reduction <maximumf>, %235, %cst_72 [1] : vector<8x8xf32> to vector<8xf32>
    %237 = vector.shape_cast %236 : vector<8xf32> to vector<8x1xf32>
    %238 = vector.broadcast %237 : vector<8x1xf32> to vector<8x8xf32>
    %239 = arith.subf %235, %238 : vector<8x8xf32>
    %240 = math.exp %239 : vector<8x8xf32>
    %cst_73 = arith.constant dense<0.000000e+00> : vector<8xf32>
    %241 = vector.multi_reduction <add>, %240, %cst_73 [1] : vector<8x8xf32> to vector<8xf32>
    %242 = vector.shape_cast %241 : vector<8xf32> to vector<8x1xf32>
    %243 = tpu.reciprocal %242 {approx = true} : vector<8x1xf32> -> vector<8x1xf32>
    %cst_74 = arith.constant dense<0.000000e+00> : vector<8x8xf32>
    %244 = tpu.matmul %240, %234, %cst_74 {dimension_numbers = #tpu.dot_dimension_numbers<[1], [0], [0], [1], [0, 0, 1, 1], [], []>} : vector<8x8xf32>, vector<8x8xf32>, vector<8x8xf32> -> vector<8x8xf32>
    %245 = vector.broadcast %243 : vector<8x1xf32> to vector<8x8xf32>
    %246 = arith.mulf %244, %245 : vector<8x8xf32>
    %247 = vector.extract_strided_slice %15 {offsets = [0, 24], sizes = [8, 8], strides = [1, 1]} : vector<16x96xf32> to vector<8x8xf32>
    %248 = vector.extract_strided_slice %14 {offsets = [0, 56], sizes = [8, 8], strides = [1, 1]} : vector<16x96xf32> to vector<8x8xf32>
    %249 = vector.extract_strided_slice %14 {offsets = [0, 88], sizes = [8, 8], strides = [1, 1]} : vector<16x96xf32> to vector<8x8xf32>
    %cst_75 = arith.constant dense<0.000000e+00> : vector<8x8xf32>
    %250 = tpu.matmul %247, %248, %cst_75 {dimension_numbers = #tpu.dot_dimension_numbers<[1], [1], [0], [0], [0, 0, 1, 0], [], []>} : vector<8x8xf32>, vector<8x8xf32>, vector<8x8xf32> -> vector<8x8xf32>
    %cst_76 = arith.constant dense<0xFF800000> : vector<8xf32>
    %251 = vector.multi_reduction <maximumf>, %250, %cst_76 [1] : vector<8x8xf32> to vector<8xf32>
    %252 = vector.shape_cast %251 : vector<8xf32> to vector<8x1xf32>
    %253 = vector.broadcast %252 : vector<8x1xf32> to vector<8x8xf32>
    %254 = arith.subf %250, %253 : vector<8x8xf32>
    %255 = math.exp %254 : vector<8x8xf32>
    %cst_77 = arith.constant dense<0.000000e+00> : vector<8xf32>
    %256 = vector.multi_reduction <add>, %255, %cst_77 [1] : vector<8x8xf32> to vector<8xf32>
    %257 = vector.shape_cast %256 : vector<8xf32> to vector<8x1xf32>
    %258 = tpu.reciprocal %257 {approx = true} : vector<8x1xf32> -> vector<8x1xf32>
    %cst_78 = arith.constant dense<0.000000e+00> : vector<8x8xf32>
    %259 = tpu.matmul %255, %249, %cst_78 {dimension_numbers = #tpu.dot_dimension_numbers<[1], [0], [0], [1], [0, 0, 1, 1], [], []>} : vector<8x8xf32>, vector<8x8xf32>, vector<8x8xf32> -> vector<8x8xf32>
    %260 = vector.broadcast %258 : vector<8x1xf32> to vector<8x8xf32>
    %261 = arith.mulf %259, %260 : vector<8x8xf32>
    %cst_79 = arith.constant dense<0.000000e+00> : vector<8x32xf32>
    %262 = tpu.matmul %246, %230, %cst_79 {dimension_numbers = #tpu.dot_dimension_numbers<[1], [0], [0], [1], [0, 0, 1, 1], [], []>} : vector<8x8xf32>, vector<8x32xf32>, vector<8x32xf32> -> vector<8x32xf32>
    %263 = arith.addf %193, %262 : vector<8x32xf32>
    %cst_80 = arith.constant dense<0.000000e+00> : vector<8x32xf32>
    %264 = tpu.matmul %261, %231, %cst_80 {dimension_numbers = #tpu.dot_dimension_numbers<[1], [0], [0], [1], [0, 0, 1, 1], [], []>} : vector<8x8xf32>, vector<8x32xf32>, vector<8x32xf32> -> vector<8x32xf32>
    %265 = arith.addf %195, %264 : vector<8x32xf32>
    %266 = vector.extract_strided_slice %14 {offsets = [8, 24], sizes = [8, 8], strides = [1, 1]} : vector<16x96xf32> to vector<8x8xf32>
    %267 = vector.extract_strided_slice %15 {offsets = [8, 56], sizes = [8, 8], strides = [1, 1]} : vector<16x96xf32> to vector<8x8xf32>
    %268 = vector.extract_strided_slice %15 {offsets = [8, 88], sizes = [8, 8], strides = [1, 1]} : vector<16x96xf32> to vector<8x8xf32>
    %cst_81 = arith.constant dense<0.000000e+00> : vector<8x8xf32>
    %269 = tpu.matmul %266, %267, %cst_81 {dimension_numbers = #tpu.dot_dimension_numbers<[1], [1], [0], [0], [0, 0, 1, 0], [], []>} : vector<8x8xf32>, vector<8x8xf32>, vector<8x8xf32> -> vector<8x8xf32>
    %cst_82 = arith.constant dense<0xFF800000> : vector<8xf32>
    %270 = vector.multi_reduction <maximumf>, %269, %cst_82 [1] : vector<8x8xf32> to vector<8xf32>
    %271 = vector.shape_cast %270 : vector<8xf32> to vector<8x1xf32>
    %272 = vector.broadcast %271 : vector<8x1xf32> to vector<8x8xf32>
    %273 = arith.subf %269, %272 : vector<8x8xf32>
    %274 = math.exp %273 : vector<8x8xf32>
    %cst_83 = arith.constant dense<0.000000e+00> : vector<8xf32>
    %275 = vector.multi_reduction <add>, %274, %cst_83 [1] : vector<8x8xf32> to vector<8xf32>
    %276 = vector.shape_cast %275 : vector<8xf32> to vector<8x1xf32>
    %277 = tpu.reciprocal %276 {approx = true} : vector<8x1xf32> -> vector<8x1xf32>
    %cst_84 = arith.constant dense<0.000000e+00> : vector<8x8xf32>
    %278 = tpu.matmul %274, %268, %cst_84 {dimension_numbers = #tpu.dot_dimension_numbers<[1], [0], [0], [1], [0, 0, 1, 1], [], []>} : vector<8x8xf32>, vector<8x8xf32>, vector<8x8xf32> -> vector<8x8xf32>
    %279 = vector.broadcast %277 : vector<8x1xf32> to vector<8x8xf32>
    %280 = arith.mulf %278, %279 : vector<8x8xf32>
    %281 = vector.extract_strided_slice %15 {offsets = [8, 24], sizes = [8, 8], strides = [1, 1]} : vector<16x96xf32> to vector<8x8xf32>
    %282 = vector.extract_strided_slice %14 {offsets = [8, 56], sizes = [8, 8], strides = [1, 1]} : vector<16x96xf32> to vector<8x8xf32>
    %283 = vector.extract_strided_slice %14 {offsets = [8, 88], sizes = [8, 8], strides = [1, 1]} : vector<16x96xf32> to vector<8x8xf32>
    %cst_85 = arith.constant dense<0.000000e+00> : vector<8x8xf32>
    %284 = tpu.matmul %281, %282, %cst_85 {dimension_numbers = #tpu.dot_dimension_numbers<[1], [1], [0], [0], [0, 0, 1, 0], [], []>} : vector<8x8xf32>, vector<8x8xf32>, vector<8x8xf32> -> vector<8x8xf32>
    %cst_86 = arith.constant dense<0xFF800000> : vector<8xf32>
    %285 = vector.multi_reduction <maximumf>, %284, %cst_86 [1] : vector<8x8xf32> to vector<8xf32>
    %286 = vector.shape_cast %285 : vector<8xf32> to vector<8x1xf32>
    %287 = vector.broadcast %286 : vector<8x1xf32> to vector<8x8xf32>
    %288 = arith.subf %284, %287 : vector<8x8xf32>
    %289 = math.exp %288 : vector<8x8xf32>
    %cst_87 = arith.constant dense<0.000000e+00> : vector<8xf32>
    %290 = vector.multi_reduction <add>, %289, %cst_87 [1] : vector<8x8xf32> to vector<8xf32>
    %291 = vector.shape_cast %290 : vector<8xf32> to vector<8x1xf32>
    %292 = tpu.reciprocal %291 {approx = true} : vector<8x1xf32> -> vector<8x1xf32>
    %cst_88 = arith.constant dense<0.000000e+00> : vector<8x8xf32>
    %293 = tpu.matmul %289, %283, %cst_88 {dimension_numbers = #tpu.dot_dimension_numbers<[1], [0], [0], [1], [0, 0, 1, 1], [], []>} : vector<8x8xf32>, vector<8x8xf32>, vector<8x8xf32> -> vector<8x8xf32>
    %294 = vector.broadcast %292 : vector<8x1xf32> to vector<8x8xf32>
    %295 = arith.mulf %293, %294 : vector<8x8xf32>
    %cst_89 = arith.constant dense<0.000000e+00> : vector<8x32xf32>
    %296 = tpu.matmul %280, %230, %cst_89 {dimension_numbers = #tpu.dot_dimension_numbers<[1], [0], [0], [1], [0, 0, 1, 1], [], []>} : vector<8x8xf32>, vector<8x32xf32>, vector<8x32xf32> -> vector<8x32xf32>
    %297 = arith.addf %227, %296 : vector<8x32xf32>
    %cst_90 = arith.constant dense<0.000000e+00> : vector<8x32xf32>
    %298 = tpu.matmul %295, %231, %cst_90 {dimension_numbers = #tpu.dot_dimension_numbers<[1], [0], [0], [1], [0, 0, 1, 1], [], []>} : vector<8x8xf32>, vector<8x32xf32>, vector<8x32xf32> -> vector<8x32xf32>
    %299 = arith.addf %229, %298 : vector<8x32xf32>
    %c0_91 = arith.constant 0 : index
    %c0_92 = arith.constant 0 : index
    %c0_93 = arith.constant 0 : index
    %300 = vector.load %arg3[%c0_91, %c0_92, %c0_93] : memref<2x8x32xf32, #tpu.memory_space<vmem>>, vector<1x8x32xf32>
    %301 = vector.shape_cast %300 : vector<1x8x32xf32> to vector<8x32xf32>
    %302 = vector.shape_cast %263 : vector<8x32xf32> to vector<1x8x32xf32>
    tpu.vector_store %arg3[%c0_91, %c0_92, %c0_93], %302 {strides = array<i32>} : memref<2x8x32xf32, #tpu.memory_space<vmem>>, vector<1x8x32xf32>,
    %c0_94 = arith.constant 0 : index
    %c0_95 = arith.constant 0 : index
    %c0_96 = arith.constant 0 : index
    %303 = vector.load %arg4[%c0_94, %c0_95, %c0_96] : memref<2x8x32xf32, #tpu.memory_space<vmem>>, vector<1x8x32xf32>
    %304 = vector.shape_cast %303 : vector<1x8x32xf32> to vector<8x32xf32>
    %305 = vector.shape_cast %265 : vector<8x32xf32> to vector<1x8x32xf32>
    tpu.vector_store %arg4[%c0_94, %c0_95, %c0_96], %305 {strides = array<i32>} : memref<2x8x32xf32, #tpu.memory_space<vmem>>, vector<1x8x32xf32>,
    %c1_97 = arith.constant 1 : index
    %c0_98 = arith.constant 0 : index
    %c0_99 = arith.constant 0 : index
    %306 = vector.load %arg3[%c1_97, %c0_98, %c0_99] : memref<2x8x32xf32, #tpu.memory_space<vmem>>, vector<1x8x32xf32>
    %307 = vector.shape_cast %306 : vector<1x8x32xf32> to vector<8x32xf32>
    %308 = vector.shape_cast %297 : vector<8x32xf32> to vector<1x8x32xf32>
    tpu.vector_store %arg3[%c1_97, %c0_98, %c0_99], %308 {strides = array<i32>} : memref<2x8x32xf32, #tpu.memory_space<vmem>>, vector<1x8x32xf32>,
    %c1_100 = arith.constant 1 : index
    %c0_101 = arith.constant 0 : index
    %c0_102 = arith.constant 0 : index
    %309 = vector.load %arg4[%c1_100, %c0_101, %c0_102] : memref<2x8x32xf32, #tpu.memory_space<vmem>>, vector<1x8x32xf32>
    %310 = vector.shape_cast %309 : vector<1x8x32xf32> to vector<8x32xf32>
    %311 = vector.shape_cast %299 : vector<8x32xf32> to vector<1x8x32xf32>
    tpu.vector_store %arg4[%c1_100, %c0_101, %c0_102], %311 {strides = array<i32>} : memref<2x8x32xf32, #tpu.memory_space<vmem>>, vector<1x8x32xf32>,
    return
  }
}

</mosaic_0001>

<bundles_post_ra>
// kernel: tpu_custom_call.1
= control target key start
LH: loop header
LB: loop body
LE: loop exit
PB: predicated region body
PF: predicated region fallthrough
CT: control target
= control target key end

     0   :  { %10 = vsyncpa [#allocation3], 0  ;;  %vm41_vm0 = vcmask 261120   ;;  %s5173_s0 = inlined_call_operand.vmem [shape: f32[2,8,32], index: 0, kind: input, shape index: {}]   ;;  %s5174_s1 = inlined_call_operand.vmem [shape: f32[2,8,32], index: 1, kind: input, shape index: {}]   ;;  %s5175_s2 = inlined_call_operand.vmem [shape: f32[2,65,96], index: 2, kind: input, shape index: {}]   ;;  %s5176_s3 = inlined_call_operand.hbm [shape: f32[2,8,32], index: 3, kind: output, shape index: {0}]   ;;  %s5177_s4 = inlined_call_operand.hbm [shape: f32[2,8,32], index: 4, kind: output, shape index: {1}]  }
   0x1   :  { %v18_v0 = vld [vmem:[%s5175_s2] sm:$0xff]  ;;  %v19_v1 = vld [vmem:[%s5175_s2 + $0x8] sm:$0xff]  ;;  %v4072_v4 = vld [vmem:[%s5175_s2 + $0x50] sm:$0xff] }
   0x2   :  { %v4071_v2 = vld [vmem:[%s5175_s2 + $0x48] sm:$0xff]  ;;  %v4520_v3 = vpack.c.bf16 %v19_v1, %v18_v0  ;;  %v20_v5 = vld [vmem:[%s5175_s2 + $0x10] sm:$0xff]  ;;  %v21_v6 = vld [vmem:[%s5175_s2 + $0x18] sm:$0xff] }
   0x3   :  { %v4528_v7 = vpack.c.bf16 %v4072_v4, %v4071_v2  ;;  %v4524_v8 = vpack.c.bf16 %v21_v6, %v20_v5  ;;  %v4073_v9 = vld [vmem:[%s5175_s2 + $0x58] sm:$0xff]  ;;  %v4074_v10 = vld [vmem:[%s5175_s2 + $0x60] sm:$0xff] }
   0x4   :  { %v37_v11 = vld [vmem:[%s5173_s0] sm:$0xff]  ;;  %4521 = vmatprep.subr.bf16.mxu0 %v4520_v3  ;;  %v4532_v12 = vpack.c.bf16 %v4074_v10, %v4073_v9 }
   0x5   :  { %4266 = vmatprep.mubr.msk.f32.mxu0 %vm41_vm0, %v37_v11  ;;  %v39_v13 = vld [vmem:[%s5174_s1] sm:$0xff]  ;;  %4529 = vmatprep.subr.bf16.mxu1 %v4528_v7 }
   0x6   :  { %4523 = vmatpush3.bf16.msra.mxu0 %v4520_v3 }
   0x7   :  { %11 = vsyncpa [#allocation5], 0  ;;  %4531 = vmatpush3.bf16.msra.mxu1 %v4528_v7  ;;  %4525 = vmatprep.subr.bf16.mxu0 %v4524_v8  ;;  %v38_v14 = vld [vmem:[%s5173_s0 + $0x8] sm:$0xff]  ;;  %v4693_v16 = vmov 0.0   ;;  %vm4694_vm1 = vmmov 0   ;;  %s4695_s0 = smov 96  }
   0x8   :  { %4533 = vmatprep.subr.bf16.mxu1 %v4532_v12  ;;  %4277 = vmatprep.mubr.msk.f32.mxu1 %vm41_vm0, %v39_v13  ;;  %v40_v15 = vld [vmem:[%s5174_s1 + $0x8] sm:$0xff]  ;;  %s4696_s1 = smov 64   ;;  %vm215_vm2 = vcmask 64512   ;;  %v22_v35 = vld [vmem:[%s5175_s2 + $0x20] sm:$0xff]  ;;  %s4697_s17 = smov 88  }
   0x9   :  { %v4075_v48 = vld [vmem:[%s5175_s2 + $0x68] sm:$0xff]  ;;  %s4698_s18 = smov 120   ;;  %s4699_s19 = smov 56  }
   0xa   :  { %4527 = vmatpush3.bf16.msra.mxu0 %v4524_v8  ;;  %s4700_s22 = smov 80   ;;  %s4701_s23 = smov 112  }
   0xb   :  { %4535 = vmatpush3.bf16.msra.mxu1 %v4532_v12  ;;  %4280 = vmatprep.subr.mxu0 %v4693_v16  ;;  %s4702_s26 = smov 48   ;;  %s4703_s27 = smov 72  }
   0xc   :  { %4285 = vmatprep.subr.mxu1 %v4693_v16  ;;  %s4704_s30 = smov 104   ;;  %s4705_s7 = smov 40  }
   0xd   :  { %4267 = vmatmul.mubr.msk.f32.vlgmr.msra.gmra.mrb[0].mxu0 %vm41_vm0, %v38_v14  ;;  %s4707_s15 = smov [#allocation4]  }
   0xe   :  { %4278 = vmatmul.mubr.msk.f32.vlgmr.msra.gmra.mrb[0].mxu1 %vm41_vm0, %v40_v15  ;;  %4282 = vmatprep.mubr.msk.f32.mxu0 %vm4694_vm1, %v4693_v16  ;;  %s4056_s16 = sshll.u32 %s4707_s15, 4  ;;  %s4057_s16 = int_to_ptr.vmem [resolvable:$true] %s4056_s16 }
   0xf   :  { %4287 = vmatprep.mubr.msk.f32.mxu1 %vm4694_vm1, %v4693_v16 }
  0xe0   :  { %v4781_v17 = vpop.f32.mrb[0].mxu0 }
  0xe1   :  { %v4783_v18 = vpop.f32.mrb[0].mxu1  ;;  %v4785_v19 = vpop.f32.mrb[1].mxu0 }
  0xe2   :  { %v4787_v20 = vpop.f32.mrb[1].mxu1  ;;  %378 = vrot.lane.b32.xlu1 %v4785_v19, %s4695_s0 }
  0xe3   :  { %213 = vrot.lane.b32.xlu0 %v4787_v20, %s4695_s0 }
  0xe6   :  { %301 = vrot.lane.b32.xlu1 %v4787_v20, %s4696_s1 }
 0x154   :  { %v379_v21 = vpop.permute.xlu1 %378 }
 0x155   :  { %v214_v22 = vpop.permute.xlu0 %213 }
 0x156   :  { %4281 = vmatpush3.xpose.msk.msra.mxu0 %vm215_vm2, %v214_v22 }
 0x157   :  { %4290 = vmatprep.subr.mxu0 %v4693_v16 }
 0x158   :  { %v302_v23 = vpop.permute.xlu1 %301 }
 0x159   :  { %4283 = vmatmul.mubr.msk.f32.vlgmr.msra.gmra.mrb[2].mxu0 %vm215_vm2, %v4785_v19  ;;  %4286 = vmatpush3.msra.mxu1 %v302_v23 }
 0x15a   :  { %4291 = vmatpush3.xpose.msk.msra.mxu0 %vm215_vm2, %v379_v21  ;;  %4292 = vmatprep.mubr.msk.f32.mxu0 %vm4694_vm1, %v4693_v16 }
 0x15b   :  { %4295 = vmatprep.subr.mxu1 %v4693_v16  ;;  %4300 = vmatprep.subr.mxu0 %v4693_v16 }
 0x15d   :  { %4293 = vmatmul.mubr.msk.f32.vlgmr.msra.gmra.mrb[4].mxu0 %vm215_vm2, %v4787_v20 }
 0x15e   :  { %4302 = vmatprep.mubr.msk.f32.mxu0 %vm4694_vm1, %v4693_v16  ;;  %4301 = vmatpush3.msra.mxu0 %v22_v35 }
 0x15f   :  { %4310 = vmatprep.subr.mxu0 %v4693_v16 }
 0x22c   :  { %v287_v24 = vpop.f32.mrb[2].mxu0 }
 0x22d   :  { %v4284_v25 = vpop.f32.mrb[3].mxu0  ;;  %v291_v26 = vsel %vm215_vm2, %v287_v24, -inf }
 0x22e   :  { %292 = vmax.xlane.f32.xlu0 %v291_v26 }
 0x230   :  { %v450_v27 = vpop.f32.mrb[4].mxu0 }
 0x231   :  { %v4294_v28 = vpop.f32.mrb[5].mxu0  ;;  %v454_v34 = vsel %vm215_vm2, %v450_v27, -inf }
 0x244   :  { %690 = vrot.lane.b32.xlu0 %v4783_v18, %s4695_s0 }
 0x2bb   :  { %v293_v29 = vpop.xlane.xlu0 %292 }
 0x2bc   :  { %v294_v30 = vsub.f32 %v287_v24, %v293_v29 }
 0x2be   :  { %v295_v31 = vmul.f32 1.442695, %v294_v30 }
 0x2bf   :  { %v691_v47 = vpop.permute.xlu0 %690 }
 0x2c0   :  { %4581 = vpow2.f32 %v295_v31 }
 0x2ca   :  { %v4582_v32 = vpop.eup %4581 }
 0x2cb   :  { %4288 = vmatmul.mubr.msk.f32.vlgmr.msra.gmra.mrb[2].mxu1 %vm215_vm2, %v4582_v32  ;;  %v297_v33 = vsel %vm215_vm2, %v4582_v32, 0.0 }
 0x2cc   :  { %298 = vadd.xlane.f32.xlu1 %v297_v33  ;;  %4297 = vmatprep.mubr.msk.f32.mxu1 %vm4694_vm1, %v4693_v16 }
 0x2d0   :  { %455 = vmax.xlane.f32.xlu1 %v454_v34 }
 0x2e1   :  { %464 = vrot.lane.b32.xlu1 %v4785_v19, %s4696_s1 }
 0x359   :  { %v299_v36 = vpop.xlane.xlu1 %298 }
 0x35d   :  { %v456_v37 = vpop.xlane.xlu1 %455 }
 0x35e   :  { %v457_v38 = vsub.f32 %v450_v27, %v456_v37 }
 0x360   :  { %v458_v39 = vmul.f32 1.442695, %v457_v38 }
 0x361   :  { %v465_v40 = vpop.permute.xlu1 %464 }
 0x362   :  { %4583 = vpow2.f32 %v458_v39  ;;  %4296 = vmatpush3.msra.mxu1 %v465_v40 }
 0x363   :  { %4305 = vmatprep.subr.mxu1 %v4693_v16  ;;  %4585 = vrcp.f32 %v299_v36 }
 0x36c   :  { %v4584_v41 = vpop.eup %4583 }
 0x36d   :  { %4298 = vmatmul.mubr.msk.f32.vlgmr.msra.gmra.mrb[4].mxu1 %vm215_vm2, %v4584_v41  ;;  %v460_v42 = vsel %vm215_vm2, %v4584_v41, 0.0  ;;  %v4586_v43 = vpop.eup %4585 }
 0x36e   :  { %461 = vadd.xlane.f32.xlu0 %v460_v42  ;;  %4307 = vmatprep.mubr.msk.f32.mxu1 %vm4694_vm1, %v4693_v16 }
 0x36f   :  { %4306 = vmatpush3.msra.mxu1 %v4075_v48 }
 0x370   :  { %4315 = vmatprep.subr.mxu1 %v4693_v16 }
 0x384   :  { %854 = vrot.lane.b32.xlu0 %v4781_v17, %s4695_s0 }
 0x39e   :  { %v373_v44 = vpop.f32.mrb[2].mxu1 }
 0x39f   :  { %v377_v45 = vmul.f32 %v4586_v43, %v373_v44  ;;  %v4289_v46 = vpop.f32.mrb[3].mxu1 }
 0x3a1   :  { %4303 = vmatmul.mubr.msk.f32.vlgmr.msra.gmra.mrb[6].mxu0 %vm215_vm2, %v377_v45 }
 0x3a2   :  { %4311 = vmatpush3.xpose.msk.msra.mxu0 %vm215_vm2, %v691_v47  ;;  %4312 = vmatprep.mubr.msk.f32.mxu0 %vm4694_vm1, %v4693_v16  ;;  %v23_v47 = vld [vmem:[%s5175_s2 + $0x28] sm:$0xff] }
 0x3a3   :  { %4320 = vmatprep.subr.mxu0 %v4693_v16 }
 0x3a5   :  { %4313 = vmatmul.mubr.msk.f32.vlgmr.msra.gmra.mrb[8].mxu0 %vm215_vm2, %v4781_v17 }
 0x3a6   :  { %4322 = vmatprep.mubr.msk.f32.mxu0 %vm4694_vm1, %v4693_v16 }
 0x3fb   :  { %v462_v49 = vpop.xlane.xlu0 %461 }
 0x3fc   :  { %4587 = vrcp.f32 %v462_v49 }
 0x3ff   :  { %v855_v50 = vpop.permute.xlu0 %854 }
 0x400   :  { %4321 = vmatpush3.xpose.msk.msra.mxu0 %vm215_vm2, %v855_v50 }
 0x401   :  { %4330 = vmatprep.subr.mxu0 %v4693_v16 }
 0x403   :  { %4323 = vmatmul.mubr.msk.f32.vlgmr.msra.gmra.mrb[10].mxu0 %vm215_vm2, %v4783_v18 }
 0x404   :  { %4331 = vmatpush3.msra.mxu0 %v22_v35  ;;  %4332 = vmatprep.mubr.msk.f32.mxu0 %vm4694_vm1, %v4693_v16 }
 0x405   :  { %4340 = vmatprep.subr.mxu0 %v4693_v16 }
 0x406   :  { %v4588_v51 = vpop.eup %4587 }
 0x440   :  { %v536_v52 = vpop.f32.mrb[4].mxu1 }
 0x441   :  { %v540_v53 = vmul.f32 %v4588_v51, %v536_v52  ;;  %v4299_v54 = vpop.f32.mrb[5].mxu1 }
 0x443   :  { %4308 = vmatmul.mubr.msk.f32.vlgmr.msra.gmra.mrb[6].mxu1 %vm215_vm2, %v540_v53 }
 0x444   :  { %4317 = vmatprep.mubr.msk.f32.mxu1 %vm4694_vm1, %v4693_v16 }
 0x478   :  { %v763_v55 = vpop.f32.mrb[8].mxu0 }
 0x479   :  { %v4314_v56 = vpop.f32.mrb[9].mxu0  ;;  %v767_v57 = vsel %vm215_vm2, %v763_v55, -inf }
 0x47a   :  { %768 = vmax.xlane.f32.xlu1 %v767_v57  ;;  %v4076_v57 = vld [vmem:[%s5175_s2 + $0x70] sm:$0xff] }
 0x48b   :  { %777 = vrot.lane.b32.xlu1 %v4783_v18, %s4696_s1 }
 0x48f   :  { %1167 = vrot.lane.b32.xlu1 %v4787_v20, %s4697_s17 }
 0x493   :  { %1165 = vrot.lane.b32.xlu1 %v4785_v19, %s4698_s18 }
 0x4d6   :  { %v926_v58 = vpop.f32.mrb[10].mxu0 }
 0x4d7   :  { %v4324_v59 = vpop.f32.mrb[11].mxu0  ;;  %v930_v60 = vsel %vm215_vm2, %v926_v58, -inf }
 0x4d8   :  { %931 = vmax.xlane.f32.xlu1 %v930_v60 }
 0x507   :  { %v769_v61 = vpop.xlane.xlu1 %768 }
 0x508   :  { %v770_v62 = vsub.f32 %v763_v55, %v769_v61 }
 0x50a   :  { %v771_v63 = vmul.f32 1.442695, %v770_v62 }
 0x50b   :  { %v778_v0 = vpop.permute.xlu1 %777 }
 0x50c   :  { %4589 = vpow2.f32 %v771_v63  ;;  %4316 = vmatpush3.msra.mxu1 %v778_v0 }
 0x50d   :  { %4325 = vmatprep.subr.mxu1 %v4693_v16 }
 0x50f   :  { %v1168_v3 = vpop.permute.xlu1 %1167 }
 0x513   :  { %v1166_v4 = vpop.permute.xlu1 %1165 }
 0x516   :  { %v4590_v1 = vpop.eup %4589 }
 0x517   :  { %4318 = vmatmul.mubr.msk.f32.vlgmr.msra.gmra.mrb[8].mxu1 %vm215_vm2, %v4590_v1  ;;  %v773_v2 = vsel %vm215_vm2, %v4590_v1, 0.0 }
 0x518   :  { %774 = vadd.xlane.f32.xlu0 %v773_v2  ;;  %4327 = vmatprep.mubr.msk.f32.mxu1 %vm4694_vm1, %v4693_v16 }
 0x52e   :  { %940 = vrot.lane.b32.xlu0 %v4781_v17, %s4696_s1 }
 0x565   :  { %v932_v5 = vpop.xlane.xlu1 %931 }
 0x566   :  { %v933_v6 = vsub.f32 %v926_v58, %v932_v5 }
 0x568   :  { %v934_v7 = vmul.f32 1.442695, %v933_v6 }
 0x56a   :  { %4591 = vpow2.f32 %v934_v7 }
 0x574   :  { %v4592_v8 = vpop.eup %4591 }
 0x575   :  { %v936_v9 = vsel %vm215_vm2, %v4592_v8, 0.0 }
 0x576   :  { %937 = vadd.xlane.f32.xlu1 %v936_v9 }
 0x587   :  { %1332 = vrot.lane.b32.xlu1 %v4785_v19, %s4697_s17 }
 0x58b   :  { %1253 = vrot.lane.b32.xlu1 %v4787_v20, %s4699_s19 }
 0x58f   :  { %1330 = vrot.lane.b32.xlu1 %v4787_v20, %s4698_s18 }
 0x5a5   :  { %v775_v10 = vpop.xlane.xlu0 %774 }
 0x5a6   :  { %4593 = vrcp.f32 %v775_v10 }
 0x5a9   :  { %v941_v11 = vpop.permute.xlu0 %940 }
 0x5aa   :  { %4326 = vmatpush3.msra.mxu1 %v941_v11 }
 0x5ab   :  { %4328 = vmatmul.mubr.msk.f32.vlgmr.msra.gmra.mrb[10].mxu1 %vm215_vm2, %v4592_v8  ;;  %4335 = vmatprep.subr.mxu1 %v4693_v16 }
 0x5ac   :  { %4336 = vmatpush3.msra.mxu1 %v4075_v48  ;;  %4337 = vmatprep.mubr.msk.f32.mxu1 %vm4694_vm1, %v4693_v16 }
 0x5ad   :  { %4345 = vmatprep.subr.mxu1 %v4693_v16 }
 0x5b0   :  { %v4594_v12 = vpop.eup %4593 }
 0x5ea   :  { %v849_v13 = vpop.f32.mrb[8].mxu1 }
 0x5eb   :  { %v853_v14 = vmul.f32 %v4594_v12, %v849_v13  ;;  %v4319_v15 = vpop.f32.mrb[9].mxu1 }
 0x5ed   :  { %4333 = vmatmul.mubr.msk.f32.vlgmr.msra.gmra.mrb[12].mxu0 %vm215_vm2, %v853_v14 }
 0x5ee   :  { %4341 = vmatpush3.xpose.msk.msra.mxu0 %vm215_vm2, %v1168_v3  ;;  %4342 = vmatprep.mubr.msk.f32.mxu0 %vm4694_vm1, %v4693_v16 }
 0x5ef   :  { %4350 = vmatprep.subr.mxu0 %v4693_v16 }
 0x5f1   :  { %4343 = vmatmul.mubr.msk.f32.vlgmr.msra.gmra.mrb[14].mxu0 %vm215_vm2, %v1166_v4 }
 0x5f2   :  { %4352 = vmatprep.mubr.msk.f32.mxu0 %vm4694_vm1, %v4693_v16 }
 0x603   :  { %v938_v21 = vpop.xlane.xlu1 %937 }
 0x604   :  { %4595 = vrcp.f32 %v938_v21 }
 0x607   :  { %v1333_v22 = vpop.permute.xlu1 %1332 }
 0x608   :  { %4351 = vmatpush3.xpose.msk.msra.mxu0 %vm215_vm2, %v1333_v22 }
 0x609   :  { %4360 = vmatprep.subr.mxu0 %v4693_v16 }
 0x60b   :  { %v1254_v23 = vpop.permute.xlu1 %1253 }
 0x60e   :  { %v4596_v25 = vpop.eup %4595 }
 0x60f   :  { %v1331_v24 = vpop.permute.xlu1 %1330 }
 0x610   :  { %4353 = vmatmul.mubr.msk.f32.vlgmr.msra.gmra.mrb[16].mxu0 %vm215_vm2, %v1331_v24 }
 0x611   :  { %4362 = vmatprep.mubr.msk.f32.mxu0 %vm4694_vm1, %v4693_v16  ;;  %4361 = vmatpush3.msra.mxu0 %v23_v47 }
 0x612   :  { %4370 = vmatprep.subr.mxu0 %v4693_v16 }
 0x67e   :  { %v1012_v26 = vpop.f32.mrb[10].mxu1 }
 0x67f   :  { %v1016_v27 = vmul.f32 %v4596_v25, %v1012_v26  ;;  %v4329_v28 = vpop.f32.mrb[11].mxu1 }
 0x681   :  { %4338 = vmatmul.mubr.msk.f32.vlgmr.msra.gmra.mrb[12].mxu1 %vm215_vm2, %v1016_v27 }
 0x682   :  { %4346 = vmatpush3.msra.mxu1 %v1254_v23  ;;  %4347 = vmatprep.mubr.msk.f32.mxu1 %vm4694_vm1, %v4693_v16 }
 0x683   :  { %4355 = vmatprep.subr.mxu1 %v4693_v16 }
 0x6c4   :  { %v1239_v29 = vpop.f32.mrb[14].mxu0 }
 0x6c5   :  { %v4344_v30 = vpop.f32.mrb[15].mxu0  ;;  %v1243_v31 = vsel %vm215_vm2, %v1239_v29, -inf }
 0x6c6   :  { %1244 = vmax.xlane.f32.xlu0 %v1243_v31 }
 0x6dc   :  { %1645 = vrot.lane.b32.xlu0 %v4783_v18, %s4697_s17 }
 0x6e0   :  { %1643 = vrot.lane.b32.xlu0 %v4781_v17, %s4698_s18 }
 0x6e3   :  { %v1404_v32 = vpop.f32.mrb[16].mxu0 }
 0x6e4   :  { %v4354_v33 = vpop.f32.mrb[17].mxu0  ;;  %v1408_v34 = vsel %vm215_vm2, %v1404_v32, -inf }
 0x6ff   :  { %1409 = vmax.xlane.f32.xlu0 %v1408_v34 }
 0x715   :  { %1810 = vrot.lane.b32.xlu0 %v4781_v17, %s4697_s17 }
 0x753   :  { %v1245_v35 = vpop.xlane.xlu0 %1244 }
 0x754   :  { %v1246_v36 = vsub.f32 %v1239_v29, %v1245_v35 }
 0x756   :  { %v1247_v37 = vmul.f32 1.442695, %v1246_v36 }
 0x757   :  { %v1646_v40 = vpop.permute.xlu0 %1645 }
 0x758   :  { %4597 = vpow2.f32 %v1247_v37 }
 0x75b   :  { %v1644_v41 = vpop.permute.xlu0 %1643 }
 0x762   :  { %v4598_v38 = vpop.eup %4597 }
 0x763   :  { %4348 = vmatmul.mubr.msk.f32.vlgmr.msra.gmra.mrb[14].mxu1 %vm215_vm2, %v4598_v38  ;;  %v1249_v39 = vsel %vm215_vm2, %v4598_v38, 0.0 }
 0x764   :  { %1250 = vadd.xlane.f32.xlu1 %v1249_v39  ;;  %4357 = vmatprep.mubr.msk.f32.mxu1 %vm4694_vm1, %v4693_v16 }
 0x775   :  { %1418 = vrot.lane.b32.xlu1 %v4785_v19, %s4699_s19 }
 0x78c   :  { %v1410_v42 = vpop.xlane.xlu0 %1409 }
 0x78d   :  { %v1411_v43 = vsub.f32 %v1404_v32, %v1410_v42 }
 0x78f   :  { %v1412_v44 = vmul.f32 1.442695, %v1411_v43 }
 0x790   :  { %v1811_v55 = vpop.permute.xlu0 %1810 }
 0x791   :  { %4599 = vpow2.f32 %v1412_v44 }
 0x79b   :  { %v4600_v45 = vpop.eup %4599 }
 0x79c   :  { %v1414_v46 = vsel %vm215_vm2, %v4600_v45, 0.0 }
 0x79d   :  { %1415 = vadd.xlane.f32.xlu1 %v1414_v46 }
 0x7ae   :  { %1808 = vrot.lane.b32.xlu1 %v4783_v18, %s4698_s18 }
 0x7b2   :  { %2123 = vrot.lane.b32.xlu1 %v4787_v20, %s4700_s22 }
 0x7b6   :  { %2121 = vrot.lane.b32.xlu1 %v4785_v19, %s4701_s23 }
 0x7f1   :  { %v1251_v48 = vpop.xlane.xlu1 %1250 }
 0x7f2   :  { %4601 = vrcp.f32 %v1251_v48 }
 0x7f5   :  { %v1419_v49 = vpop.permute.xlu1 %1418 }
 0x7f6   :  { %4356 = vmatpush3.msra.mxu1 %v1419_v49 }
 0x7f7   :  { %4358 = vmatmul.mubr.msk.f32.vlgmr.msra.gmra.mrb[16].mxu1 %vm215_vm2, %v4600_v45  ;;  %4365 = vmatprep.subr.mxu1 %v4693_v16 }
 0x7f8   :  { %4367 = vmatprep.mubr.msk.f32.mxu1 %vm4694_vm1, %v4693_v16  ;;  %4366 = vmatpush3.msra.mxu1 %v4076_v57 }
 0x7f9   :  { %4375 = vmatprep.subr.mxu1 %v4693_v16 }
 0x7fc   :  { %v4602_v50 = vpop.eup %4601 }
 0x82a   :  { %v1416_v54 = vpop.xlane.xlu1 %1415 }
 0x82b   :  { %4603 = vrcp.f32 %v1416_v54  ;;  %v24_v54 = vld [vmem:[%s5175_s2 + $0x30] sm:$0xff] }
 0x82e   :  { %v1809_v56 = vpop.permute.xlu1 %1808 }
 0x832   :  { %v2124_v10 = vpop.permute.xlu1 %2123 }
 0x835   :  { %v4604_v58 = vpop.eup %4603 }
 0x836   :  { %v1325_v51 = vpop.f32.mrb[14].mxu1  ;;  %v2122_v11 = vpop.permute.xlu1 %2121 }
 0x837   :  { %v1329_v52 = vmul.f32 %v4602_v50, %v1325_v51  ;;  %v4349_v53 = vpop.f32.mrb[15].mxu1 }
 0x839   :  { %4363 = vmatmul.mubr.msk.f32.vlgmr.msra.gmra.mrb[6].mxu0 %vm215_vm2, %v1329_v52 }
 0x83a   :  { %4371 = vmatpush3.xpose.msk.msra.mxu0 %vm215_vm2, %v1646_v40  ;;  %4372 = vmatprep.mubr.msk.f32.mxu0 %vm4694_vm1, %v4693_v16 }
 0x83b   :  { %4380 = vmatprep.subr.mxu0 %v4693_v16 }
 0x83d   :  { %4373 = vmatmul.mubr.msk.f32.vlgmr.msra.gmra.mrb[18].mxu0 %vm215_vm2, %v1644_v41 }
 0x83e   :  { %4381 = vmatpush3.xpose.msk.msra.mxu0 %vm215_vm2, %v1811_v55  ;;  %4382 = vmatprep.mubr.msk.f32.mxu0 %vm4694_vm1, %v4693_v16 }
 0x83f   :  { %4390 = vmatprep.subr.mxu0 %v4693_v16 }
 0x841   :  { %4383 = vmatmul.mubr.msk.f32.vlgmr.msra.gmra.mrb[20].mxu0 %vm215_vm2, %v1809_v56 }
 0x842   :  { %4391 = vmatpush3.msra.mxu0 %v23_v47  ;;  %4392 = vmatprep.mubr.msk.f32.mxu0 %vm4694_vm1, %v4693_v16 }
 0x843   :  { %4400 = vmatprep.subr.mxu0 %v4693_v16 }
 0x8ca   :  { %v1490_v59 = vpop.f32.mrb[16].mxu1 }
 0x8cb   :  { %v1494_v60 = vmul.f32 %v4604_v58, %v1490_v59  ;;  %v4359_v61 = vpop.f32.mrb[17].mxu1 }
 0x8cd   :  { %4368 = vmatmul.mubr.msk.f32.vlgmr.msra.gmra.mrb[6].mxu1 %vm215_vm2, %v1494_v60 }
 0x8ce   :  { %4377 = vmatprep.mubr.msk.f32.mxu1 %vm4694_vm1, %v4693_v16 }
 0x910   :  { %v1717_v62 = vpop.f32.mrb[18].mxu0 }
 0x911   :  { %v4374_v63 = vpop.f32.mrb[19].mxu0  ;;  %v1721_v0 = vsel %vm215_vm2, %v1717_v62, -inf }
 0x912   :  { %1722 = vmax.xlane.f32.xlu0 %v1721_v0  ;;  %v4077_v0 = vld [vmem:[%s5175_s2 + $0x78] sm:$0xff] }
 0x914   :  { %v1882_v1 = vpop.f32.mrb[20].mxu0 }
 0x915   :  { %v4384_v2 = vpop.f32.mrb[21].mxu0  ;;  %v1886_v3 = vsel %vm215_vm2, %v1882_v1, -inf }
 0x916   :  { %1887 = vmax.xlane.f32.xlu1 %v1886_v3 }
 0x927   :  { %2288 = vrot.lane.b32.xlu1 %v4785_v19, %s4700_s22 }
 0x928   :  { %1731 = vrot.lane.b32.xlu0 %v4783_v18, %s4699_s19 }
 0x99f   :  { %v1723_v4 = vpop.xlane.xlu0 %1722 }
 0x9a0   :  { %v1724_v5 = vsub.f32 %v1717_v62, %v1723_v4 }
 0x9a2   :  { %v1725_v6 = vmul.f32 1.442695, %v1724_v5 }
 0x9a3   :  { %v1732_v7 = vpop.permute.xlu0 %1731  ;;  %v1888_v12 = vpop.xlane.xlu1 %1887 }
 0x9a4   :  { %4605 = vpow2.f32 %v1725_v6  ;;  %4376 = vmatpush3.msra.mxu1 %v1732_v7  ;;  %v1889_v13 = vsub.f32 %v1882_v1, %v1888_v12 }
 0x9a5   :  { %4385 = vmatprep.subr.mxu1 %v4693_v16 }
 0x9a6   :  { %v1890_v14 = vmul.f32 1.442695, %v1889_v13 }
 0x9a7   :  { %v2289_v29 = vpop.permute.xlu1 %2288 }
 0x9a8   :  { %4607 = vpow2.f32 %v1890_v14 }
 0x9ae   :  { %v4606_v8 = vpop.eup %4605 }
 0x9af   :  { %4378 = vmatmul.mubr.msk.f32.vlgmr.msra.gmra.mrb[18].mxu1 %vm215_vm2, %v4606_v8  ;;  %v1727_v9 = vsel %vm215_vm2, %v4606_v8, 0.0 }
 0x9b0   :  { %1728 = vadd.xlane.f32.xlu0 %v1727_v9  ;;  %4387 = vmatprep.mubr.msk.f32.mxu1 %vm4694_vm1, %v4693_v16 }
 0x9b2   :  { %v4608_v15 = vpop.eup %4607 }
 0x9b3   :  { %v1892_v21 = vsel %vm215_vm2, %v4608_v15, 0.0 }
 0x9c6   :  { %1896 = vrot.lane.b32.xlu0 %v4781_v17, %s4699_s19 }
 0x9e5   :  { %1893 = vadd.xlane.f32.xlu0 %v1892_v21 }
 0x9fb   :  { %2286 = vrot.lane.b32.xlu0 %v4787_v20, %s4701_s23 }
 0x9ff   :  { %2601 = vrot.lane.b32.xlu0 %v4783_v18, %s4700_s22 }
 0xa03   :  { %2599 = vrot.lane.b32.xlu0 %v4781_v17, %s4701_s23 }
 0xa3d   :  { %v1729_v22 = vpop.xlane.xlu0 %1728 }
 0xa3e   :  { %4609 = vrcp.f32 %v1729_v22 }
 0xa41   :  { %v1897_v23 = vpop.permute.xlu0 %1896 }
 0xa42   :  { %4386 = vmatpush3.msra.mxu1 %v1897_v23 }
 0xa43   :  { %4388 = vmatmul.mubr.msk.f32.vlgmr.msra.gmra.mrb[20].mxu1 %vm215_vm2, %v4608_v15  ;;  %4395 = vmatprep.subr.mxu1 %v4693_v16 }
 0xa44   :  { %4396 = vmatpush3.msra.mxu1 %v4076_v57  ;;  %4397 = vmatprep.mubr.msk.f32.mxu1 %vm4694_vm1, %v4693_v16 }
 0xa45   :  { %4405 = vmatprep.subr.mxu1 %v4693_v16 }
 0xa48   :  { %v4610_v24 = vpop.eup %4609 }
 0xa72   :  { %v1894_v28 = vpop.xlane.xlu0 %1893 }
 0xa73   :  { %4611 = vrcp.f32 %v1894_v28 }
 0xa76   :  { %v2287_v30 = vpop.permute.xlu0 %2286 }
 0xa7a   :  { %v2602_v47 = vpop.permute.xlu0 %2601 }
 0xa7d   :  { %v4612_v31 = vpop.eup %4611 }
 0xa7e   :  { %v2600_v48 = vpop.permute.xlu0 %2599 }
 0xa82   :  { %v1803_v25 = vpop.f32.mrb[18].mxu1 }
 0xa83   :  { %v1807_v26 = vmul.f32 %v4610_v24, %v1803_v25  ;;  %v4379_v27 = vpop.f32.mrb[19].mxu1 }
 0xa85   :  { %4393 = vmatmul.mubr.msk.f32.vlgmr.msra.gmra.mrb[12].mxu0 %vm215_vm2, %v1807_v26 }
 0xa86   :  { %4401 = vmatpush3.xpose.msk.msra.mxu0 %vm215_vm2, %v2124_v10  ;;  %4402 = vmatprep.mubr.msk.f32.mxu0 %vm4694_vm1, %v4693_v16 }
 0xa87   :  { %4410 = vmatprep.subr.mxu0 %v4693_v16 }
 0xa89   :  { %4403 = vmatmul.mubr.msk.f32.vlgmr.msra.gmra.mrb[22].mxu0 %vm215_vm2, %v2122_v11 }
 0xa8a   :  { %4411 = vmatpush3.xpose.msk.msra.mxu0 %vm215_vm2, %v2289_v29  ;;  %4412 = vmatprep.mubr.msk.f32.mxu0 %vm4694_vm1, %v4693_v16 }
 0xa8b   :  { %4420 = vmatprep.subr.mxu0 %v4693_v16 }
 0xa8d   :  { %4413 = vmatmul.mubr.msk.f32.vlgmr.msra.gmra.mrb[24].mxu0 %vm215_vm2, %v2287_v30 }
 0xa8e   :  { %4422 = vmatprep.mubr.msk.f32.mxu0 %vm4694_vm1, %v4693_v16  ;;  %4421 = vmatpush3.msra.mxu0 %v24_v54 }
 0xa8f   :  { %4430 = vmatprep.subr.mxu0 %v4693_v16 }
 0xb16   :  { %v1968_v32 = vpop.f32.mrb[20].mxu1 }
 0xb17   :  { %v1972_v33 = vmul.f32 %v4612_v31, %v1968_v32  ;;  %v4389_v34 = vpop.f32.mrb[21].mxu1 }
 0xb19   :  { %4398 = vmatmul.mubr.msk.f32.vlgmr.msra.gmra.mrb[12].mxu1 %vm215_vm2, %v1972_v33 }
 0xb1a   :  { %4407 = vmatprep.mubr.msk.f32.mxu1 %vm4694_vm1, %v4693_v16 }
 0xb5c   :  { %v2195_v35 = vpop.f32.mrb[22].mxu0 }
 0xb5d   :  { %v4404_v36 = vpop.f32.mrb[23].mxu0  ;;  %v2199_v37 = vsel %vm215_vm2, %v2195_v35, -inf }
 0xb5e   :  { %2200 = vmax.xlane.f32.xlu1 %v2199_v37 }
 0xb60   :  { %v2360_v38 = vpop.f32.mrb[24].mxu0 }
 0xb61   :  { %v4414_v39 = vpop.f32.mrb[25].mxu0  ;;  %v2364_v40 = vsel %vm215_vm2, %v2360_v38, -inf }
 0xb62   :  { %2365 = vmax.xlane.f32.xlu0 %v2364_v40 }
 0xb6f   :  { %2209 = vrot.lane.b32.xlu1 %v4787_v20, %s4702_s26 }
 0xb78   :  { %2766 = vrot.lane.b32.xlu0 %v4781_v17, %s4700_s22 }
 0xbeb   :  { %v2201_v41 = vpop.xlane.xlu1 %2200 }
 0xbec   :  { %v2202_v42 = vsub.f32 %v2195_v35, %v2201_v41 }
 0xbee   :  { %v2203_v43 = vmul.f32 1.442695, %v2202_v42 }
 0xbef   :  { %v2210_v44 = vpop.permute.xlu1 %2209  ;;  %v2366_v49 = vpop.xlane.xlu0 %2365 }
 0xbf0   :  { %4613 = vpow2.f32 %v2203_v43  ;;  %4406 = vmatpush3.msra.mxu1 %v2210_v44  ;;  %v2367_v50 = vsub.f32 %v2360_v38, %v2366_v49 }
 0xbf1   :  { %4415 = vmatprep.subr.mxu1 %v4693_v16 }
 0xbf2   :  { %v2368_v51 = vmul.f32 1.442695, %v2367_v50 }
 0xbf3   :  { %v2767_v62 = vpop.permute.xlu0 %2766 }
 0xbf4   :  { %4615 = vpow2.f32 %v2368_v51 }
 0xbfa   :  { %v4614_v45 = vpop.eup %4613 }
 0xbfb   :  { %4408 = vmatmul.mubr.msk.f32.vlgmr.msra.gmra.mrb[22].mxu1 %vm215_vm2, %v4614_v45  ;;  %v2205_v46 = vsel %vm215_vm2, %v4614_v45, 0.0 }
 0xbfc   :  { %2206 = vadd.xlane.f32.xlu1 %v2205_v46  ;;  %4417 = vmatprep.mubr.msk.f32.mxu1 %vm4694_vm1, %v4693_v16 }
 0xbfe   :  { %v4616_v52 = vpop.eup %4615 }
 0xbff   :  { %v2370_v53 = vsel %vm215_vm2, %v4616_v52, 0.0 }
 0xc0d   :  { %2374 = vrot.lane.b32.xlu1 %v4785_v19, %s4702_s26 }
 0xc31   :  { %2371 = vadd.xlane.f32.xlu1 %v2370_v53 }
 0xc42   :  { %2764 = vrot.lane.b32.xlu1 %v4783_v18, %s4701_s23 }
 0xc46   :  { %3079 = vrot.lane.b32.xlu1 %v4787_v20, %s4703_s27 }
 0xc4a   :  { %3077 = vrot.lane.b32.xlu1 %v4785_v19, %s4704_s30 }
 0xc89   :  { %v2207_v55 = vpop.xlane.xlu1 %2206 }
 0xc8a   :  { %4617 = vrcp.f32 %v2207_v55 }
 0xc8d   :  { %v2375_v56 = vpop.permute.xlu1 %2374 }
 0xc8e   :  { %4416 = vmatpush3.msra.mxu1 %v2375_v56 }
 0xc8f   :  { %4418 = vmatmul.mubr.msk.f32.vlgmr.msra.gmra.mrb[24].mxu1 %vm215_vm2, %v4616_v52  ;;  %4425 = vmatprep.subr.mxu1 %v4693_v16 }
 0xc90   :  { %4427 = vmatprep.mubr.msk.f32.mxu1 %vm4694_vm1, %v4693_v16  ;;  %4426 = vmatpush3.msra.mxu1 %v4077_v0 }
 0xc91   :  { %4435 = vmatprep.subr.mxu1 %v4693_v16 }
 0xc94   :  { %v4618_v57 = vpop.eup %4617 }
 0xcbe   :  { %v2372_v61 = vpop.xlane.xlu1 %2371 }
 0xcbf   :  { %4619 = vrcp.f32 %v2372_v61 }
 0xcc2   :  { %v2765_v63 = vpop.permute.xlu1 %2764 }
 0xcc6   :  { %v3080_v22 = vpop.permute.xlu1 %3079 }
 0xcc9   :  { %v4620_v1 = vpop.eup %4619 }
 0xcca   :  { %v3078_v23 = vpop.permute.xlu1 %3077 }
 0xcce   :  { %v2281_v58 = vpop.f32.mrb[22].mxu1 }
 0xccf   :  { %v2285_v59 = vmul.f32 %v4618_v57, %v2281_v58  ;;  %v4409_v60 = vpop.f32.mrb[23].mxu1  ;;  %v25_v57 = vld [vmem:[%s5175_s2 + $0x38] sm:$0xff] }
 0xcd1   :  { %4423 = vmatmul.mubr.msk.f32.vlgmr.msra.gmra.mrb[6].mxu0 %vm215_vm2, %v2285_v59 }
 0xcd2   :  { %4431 = vmatpush3.xpose.msk.msra.mxu0 %vm215_vm2, %v2602_v47  ;;  %4432 = vmatprep.mubr.msk.f32.mxu0 %vm4694_vm1, %v4693_v16 }
 0xcd3   :  { %4440 = vmatprep.subr.mxu0 %v4693_v16 }
 0xcd5   :  { %4433 = vmatmul.mubr.msk.f32.vlgmr.msra.gmra.mrb[26].mxu0 %vm215_vm2, %v2600_v48 }
 0xcd6   :  { %4441 = vmatpush3.xpose.msk.msra.mxu0 %vm215_vm2, %v2767_v62  ;;  %4442 = vmatprep.mubr.msk.f32.mxu0 %vm4694_vm1, %v4693_v16 }
 0xcd7   :  { %4450 = vmatprep.subr.mxu0 %v4693_v16 }
 0xcd9   :  { %4443 = vmatmul.mubr.msk.f32.vlgmr.msra.gmra.mrb[28].mxu0 %vm215_vm2, %v2765_v63 }
 0xcda   :  { %4451 = vmatpush3.msra.mxu0 %v24_v54  ;;  %4452 = vmatprep.mubr.msk.f32.mxu0 %vm4694_vm1, %v4693_v16 }
 0xcdb   :  { %4460 = vmatprep.subr.mxu0 %v4693_v16 }
 0xd62   :  { %v2446_v2 = vpop.f32.mrb[24].mxu1 }
 0xd63   :  { %v2450_v3 = vmul.f32 %v4620_v1, %v2446_v2  ;;  %v4419_v4 = vpop.f32.mrb[25].mxu1 }
 0xd65   :  { %4428 = vmatmul.mubr.msk.f32.vlgmr.msra.gmra.mrb[6].mxu1 %vm215_vm2, %v2450_v3 }
 0xd66   :  { %4437 = vmatprep.mubr.msk.f32.mxu1 %vm4694_vm1, %v4693_v16 }
 0xda8   :  { %v2673_v5 = vpop.f32.mrb[26].mxu0 }
 0xda9   :  { %v4434_v6 = vpop.f32.mrb[27].mxu0  ;;  %v2677_v7 = vsel %vm215_vm2, %v2673_v5, -inf }
 0xdaa   :  { %2678 = vmax.xlane.f32.xlu0 %v2677_v7 }
 0xdac   :  { %v2838_v8 = vpop.f32.mrb[28].mxu0 }
 0xdad   :  { %v4444_v9 = vpop.f32.mrb[29].mxu0  ;;  %v2842_v10 = vsel %vm215_vm2, %v2838_v8, -inf }
 0xdae   :  { %2843 = vmax.xlane.f32.xlu1 %v2842_v10  ;;  %v4084_v10 = vld [vmem:[%s5175_s2 + $0x40] ss:$0 sm:$0xff] }
 0xdbf   :  { %3244 = vrot.lane.b32.xlu1 %v4785_v19, %s4703_s27 }
 0xdc0   :  { %2687 = vrot.lane.b32.xlu0 %v4783_v18, %s4702_s26 }
 0xe37   :  { %v2679_v11 = vpop.xlane.xlu0 %2678 }
 0xe38   :  { %v2680_v12 = vsub.f32 %v2673_v5, %v2679_v11 }
 0xe3a   :  { %v2681_v13 = vmul.f32 1.442695, %v2680_v12 }
 0xe3b   :  { %v2688_v14 = vpop.permute.xlu0 %2687  ;;  %v2844_v24 = vpop.xlane.xlu1 %2843 }
 0xe3c   :  { %4621 = vpow2.f32 %v2681_v13  ;;  %4436 = vmatpush3.msra.mxu1 %v2688_v14  ;;  %v2845_v25 = vsub.f32 %v2838_v8, %v2844_v24 }
 0xe3d   :  { %4445 = vmatprep.subr.mxu1 %v4693_v16 }
 0xe3e   :  { %v2846_v26 = vmul.f32 1.442695, %v2845_v25 }
 0xe3f   :  { %v3245_v35 = vpop.permute.xlu1 %3244 }
 0xe40   :  { %4623 = vpow2.f32 %v2846_v26 }
 0xe46   :  { %v4622_v15 = vpop.eup %4621 }
 0xe47   :  { %4438 = vmatmul.mubr.msk.f32.vlgmr.msra.gmra.mrb[26].mxu1 %vm215_vm2, %v4622_v15  ;;  %v2683_v21 = vsel %vm215_vm2, %v4622_v15, 0.0 }
 0xe48   :  { %2684 = vadd.xlane.f32.xlu0 %v2683_v21  ;;  %4447 = vmatprep.mubr.msk.f32.mxu1 %vm4694_vm1, %v4693_v16 }
 0xe4a   :  { %v4624_v27 = vpop.eup %4623 }
 0xe4b   :  { %v2848_v28 = vsel %vm215_vm2, %v4624_v27, 0.0 }
 0xe5e   :  { %2852 = vrot.lane.b32.xlu0 %v4781_v17, %s4702_s26 }
 0xe7d   :  { %2849 = vadd.xlane.f32.xlu0 %v2848_v28 }
 0xe93   :  { %3242 = vrot.lane.b32.xlu0 %v4787_v20, %s4704_s30 }
 0xe97   :  { %3557 = vrot.lane.b32.xlu0 %v4783_v18, %s4703_s27 }
 0xe9b   :  { %3555 = vrot.lane.b32.xlu0 %v4781_v17, %s4704_s30 }
 0xe9f   :  { %3722 = vrot.lane.b32.xlu0 %v4781_v17, %s4703_s27 }
 0xea3   :  { %3720 = vrot.lane.b32.xlu0 %v4783_v18, %s4704_s30 }
 0xea7   :  { %3330 = vrot.lane.b32.xlu0 %v4785_v19, %s4705_s7 }
 0xed5   :  { %v2685_v29 = vpop.xlane.xlu0 %2684 }
 0xed6   :  { %4625 = vrcp.f32 %v2685_v29 }
 0xed9   :  { %v2853_v30 = vpop.permute.xlu0 %2852 }
 0xeda   :  { %4446 = vmatpush3.msra.mxu1 %v2853_v30 }
 0xedb   :  { %4448 = vmatmul.mubr.msk.f32.vlgmr.msra.gmra.mrb[28].mxu1 %vm215_vm2, %v4624_v27  ;;  %4455 = vmatprep.subr.mxu1 %v4693_v16 }
 0xedc   :  { %4456 = vmatpush3.msra.mxu1 %v4077_v0  ;;  %4457 = vmatprep.mubr.msk.f32.mxu1 %vm4694_vm1, %v4693_v16 }
 0xedd   :  { %4465 = vmatprep.subr.mxu1 %v4693_v16 }
 0xee0   :  { %v4626_v31 = vpop.eup %4625 }
 0xf0a   :  { %v2850_v19 = vpop.xlane.xlu0 %2849 }
 0xf0b   :  { %4627 = vrcp.f32 %v2850_v19 }
 0xf0e   :  { %v3243_v36 = vpop.permute.xlu0 %3242 }
 0xf12   :  { %v3558_v46 = vpop.permute.xlu0 %3557 }
 0xf15   :  { %v4628_v37 = vpop.eup %4627 }
 0xf16   :  { %v3556_v47 = vpop.permute.xlu0 %3555 }
 0xf1a   :  { %v2759_v32 = vpop.f32.mrb[26].mxu1  ;;  %v3723_v51 = vpop.permute.xlu0 %3722 }
 0xf1b   :  { %v2763_v33 = vmul.f32 %v4626_v31, %v2759_v32  ;;  %v4439_v34 = vpop.f32.mrb[27].mxu1  ;;  %v4085_v31 = vld [vmem:[%s5175_s2 + $0x88] ss:$0 sm:$0xff] }
 0xf1d   :  { %4453 = vmatmul.mubr.msk.f32.vlgmr.msra.gmra.mrb[12].mxu0 %vm215_vm2, %v2763_v33 }
 0xf1e   :  { %4461 = vmatpush3.xpose.msk.msra.mxu0 %vm215_vm2, %v3080_v22  ;;  %4462 = vmatprep.mubr.msk.f32.mxu0 %vm4694_vm1, %v4693_v16  ;;  %v3721_v53 = vpop.permute.xlu0 %3720 }
 0xf1f   :  { %4470 = vmatprep.subr.mxu0 %v4693_v16 }
 0xf21   :  { %4463 = vmatmul.mubr.msk.f32.vlgmr.msra.gmra.mrb[30].mxu0 %vm215_vm2, %v3078_v23 }
 0xf22   :  { %4471 = vmatpush3.xpose.msk.msra.mxu0 %vm215_vm2, %v3245_v35  ;;  %4472 = vmatprep.mubr.msk.f32.mxu0 %vm4694_vm1, %v4693_v16  ;;  %v3331_v55 = vpop.permute.xlu0 %3330 }
 0xf23   :  { %4480 = vmatprep.subr.mxu0 %v4693_v16 }
 0xf25   :  { %4473 = vmatmul.mubr.msk.f32.vlgmr.msra.gmra.mrb[32].mxu0 %vm215_vm2, %v3243_v36 }
 0xf26   :  { %4482 = vmatprep.mubr.msk.f32.mxu0 %vm4694_vm1, %v4693_v16  ;;  %4481 = vmatpush3.msra.mxu0 %v25_v57 }
 0xf27   :  { %4490 = vmatprep.subr.mxu0 %v4693_v16 }
 0xfae   :  { %v2924_v38 = vpop.f32.mrb[28].mxu1 }
 0xfaf   :  { %v2928_v39 = vmul.f32 %v4628_v37, %v2924_v38  ;;  %v4449_v40 = vpop.f32.mrb[29].mxu1 }
 0xfb1   :  { %4458 = vmatmul.mubr.msk.f32.vlgmr.msra.gmra.mrb[12].mxu1 %vm215_vm2, %v2928_v39 }
 0xfb2   :  { %4467 = vmatprep.mubr.msk.f32.mxu1 %vm4694_vm1, %v4693_v16 }
 0xff4   :  { %v3151_v41 = vpop.f32.mrb[30].mxu0 }
 0xff5   :  { %v4464_v42 = vpop.f32.mrb[31].mxu0  ;;  %v3155_v43 = vsel %vm215_vm2, %v3151_v41, -inf }
 0xff6   :  { %3156 = vmax.xlane.f32.xlu1 %v3155_v43 }
 0xff8   :  { %v3316_v44 = vpop.f32.mrb[32].mxu0 }
 0xff9   :  { %v4474_v45 = vpop.f32.mrb[33].mxu0 }
0x1007   :  { %3165 = vrot.lane.b32.xlu1 %v4787_v20, %s4705_s7  ;;  %v3320_v20 = vsel %vm215_vm2, %v3316_v44, -inf }
0x1083   :  { %v3157_v48 = vpop.xlane.xlu1 %3156 }
0x1084   :  { %v3158_v49 = vsub.f32 %v3151_v41, %v3157_v48 }
0x1086   :  { %v3159_v50 = vmul.f32 1.442695, %v3158_v49 }
0x1087   :  { %v3166_v52 = vpop.permute.xlu1 %3165 }
0x1088   :  { %4629 = vpow2.f32 %v3159_v50  ;;  %4466 = vmatpush3.msra.mxu1 %v3166_v52 }
0x1089   :  { %4475 = vmatprep.subr.mxu1 %v4693_v16 }
0x1092   :  { %v4630_v54 = vpop.eup %4629 }
0x1093   :  { %4468 = vmatmul.mubr.msk.f32.vlgmr.msra.gmra.mrb[30].mxu1 %vm215_vm2, %v4630_v54  ;;  %v3161_v56 = vsel %vm215_vm2, %v4630_v54, 0.0 }
0x1094   :  { %4476 = vmatpush3.msra.mxu1 %v3331_v55  ;;  %3162 = vadd.xlane.f32.xlu1 %v3161_v56 }
0x1095   :  { %4477 = vmatprep.mubr.msk.f32.mxu1 %vm4694_vm1, %v4693_v16  ;;  %4485 = vmatprep.subr.mxu1 %v4693_v16 }
0x1098   :  { %3321 = vmax.xlane.f32.xlu1 %v3320_v20 }
0x1121   :  { %v3163_v58 = vpop.xlane.xlu1 %3162 }
0x1125   :  { %v3322_v59 = vpop.xlane.xlu1 %3321 }
0x1126   :  { %v3323_v60 = vsub.f32 %v3316_v44, %v3322_v59 }
0x1128   :  { %v3324_v61 = vmul.f32 1.442695, %v3323_v60 }
0x112a   :  { %4631 = vpow2.f32 %v3324_v61 }
0x112b   :  { %4633 = vrcp.f32 %v3163_v58 }
0x1134   :  { %v4632_v62 = vpop.eup %4631 }
0x1135   :  { %4478 = vmatmul.mubr.msk.f32.vlgmr.msra.gmra.mrb[32].mxu1 %vm215_vm2, %v4632_v62  ;;  %v3326_v63 = vsel %vm215_vm2, %v4632_v62, 0.0  ;;  %v4634_v0 = vpop.eup %4633 }
0x1136   :  { %3327 = vadd.xlane.f32.xlu1 %v3326_v63  ;;  %4487 = vmatprep.mubr.msk.f32.mxu1 %vm4694_vm1, %v4693_v16 }
0x1147   :  { %3643 = vrot.lane.b32.xlu1 %v4783_v18, %s4705_s7  ;;  %v4078_v18 = vld [vmem:[%s5175_s2 + $0x80] sm:$0xff]  ;;  %s4706_s2 = smov [#allocation2]  }
0x1148   :  { %4486 = vmatpush3.msra.mxu1 %v4078_v18  ;;  %s4044_s14 = sshll.u32 %s4706_s2, 4  ;;  %s4045_s14 = int_to_ptr.vmem [resolvable:$true] %s4044_s14 }
0x1149   :  { %4495 = vmatprep.subr.mxu1 %v4693_v16  ;;  %s4645_s17 = scalar_lea.vmem %s4045_s14, 256  ;;  %p4650_p1 = scmp.lt.s32.totalorder %s4045_s14, %s4045_s14 }
0x114a   :  { %p4646_p0 = scmp.ne.s32.totalorder %s4045_s14, %s4645_s17  ;;  %p4651_p2 = scmp.lt.s32.totalorder %s4645_s17, %s4645_s17 }
0x114c   :  { %p4652_p3 = por %p4651_p2, %p4650_p1 }
0x114e   :  { %p4653_p4 = pnand %p4652_p3, %p4646_p0 }
0x1166   :  { %v3237_v1 = vpop.f32.mrb[30].mxu1 }
0x1167   :  { %v3241_v2 = vmul.f32 %v4634_v0, %v3237_v1  ;;  %v4469_v3 = vpop.f32.mrb[31].mxu1 }
0x1169   :  { %4483 = vmatmul.mubr.msk.f32.vlgmr.msra.gmra.mrb[6].mxu0 %vm215_vm2, %v3241_v2 }
0x116a   :  { %4491 = vmatpush3.xpose.msk.msra.mxu0 %vm215_vm2, %v3558_v46  ;;  %4492 = vmatprep.mubr.msk.f32.mxu0 %vm4694_vm1, %v4693_v16 }
0x116b   :  { %4500 = vmatprep.subr.mxu0 %v4693_v16 }
0x116d   :  { %4493 = vmatmul.mubr.msk.f32.vlgmr.msra.gmra.mrb[34].mxu0 %vm215_vm2, %v3556_v47 }
0x116e   :  { %4501 = vmatpush3.xpose.msk.msra.mxu0 %vm215_vm2, %v3723_v51  ;;  %4502 = vmatprep.mubr.msk.f32.mxu0 %vm4694_vm1, %v4693_v16 }
0x116f   :  { %4510 = vmatprep.subr.mxu0 %v4693_v16 }
0x1171   :  { %4503 = vmatmul.mubr.msk.f32.vlgmr.msra.gmra.mrb[36].mxu0 %vm215_vm2, %v3721_v53 }
0x1172   :  { %4511 = vmatpush3.msra.mxu0 %v25_v57  ;;  %4512 = vmatprep.mubr.msk.f32.mxu0 %vm4694_vm1, %v4693_v16 }
0x11c3   :  { %v3328_v4 = vpop.xlane.xlu1 %3327 }
0x11c4   :  { %4635 = vrcp.f32 %v3328_v4 }
0x11c7   :  { %v3644_v9 = vpop.permute.xlu1 %3643 }
0x11ce   :  { %v4636_v5 = vpop.eup %4635 }
0x1208   :  { %v3402_v6 = vpop.f32.mrb[32].mxu1 }
0x1209   :  { %v3406_v7 = vmul.f32 %v4636_v5, %v3402_v6  ;;  %v4479_v8 = vpop.f32.mrb[33].mxu1 }
0x120b   :  { %4488 = vmatmul.mubr.msk.f32.vlgmr.msra.gmra.mrb[6].mxu1 %vm215_vm2, %v3406_v7 }
0x120c   :  { %4496 = vmatpush3.msra.mxu1 %v3644_v9  ;;  %4497 = vmatprep.mubr.msk.f32.mxu1 %vm4694_vm1, %v4693_v16 }
0x120d   :  { %4505 = vmatprep.subr.mxu1 %v4693_v16 }
0x123c   :  { %v3476_v11 = vpop.f32.mrb[6].mxu0 }
0x123d   :  { %v4536_v12 = vadd.f32 %v4084_v10, %v3476_v11  ;;  %v4484_v13 = vpop.f32.mrb[7].mxu0 }
0x123f   :  { %4033 = vst.msk [vmem:[#allocation2] sm:$0xff] %vm41_vm0, %v4536_v12 }
0x1240   :  { %v3629_v14 = vpop.f32.mrb[34].mxu0 }
0x1241   :  { %v4494_v15 = vpop.f32.mrb[35].mxu0  ;;  %v3633_v21 = vsel %vm215_vm2, %v3629_v14, -inf }
0x1242   :  { %3634 = vmax.xlane.f32.xlu0 %v3633_v21 }
0x1244   :  { %v3794_v22 = vpop.f32.mrb[36].mxu0 }
0x1245   :  { %v4504_v23 = vpop.f32.mrb[37].mxu0  ;;  %v3798_v24 = vsel %vm215_vm2, %v3794_v22, -inf }
0x1246   :  { %3799 = vmax.xlane.f32.xlu1 %v3798_v24 }
0x1257   :  { %3808 = vrot.lane.b32.xlu1 %v4781_v17, %s4705_s7 }
0x12cf   :  { %v3635_v25 = vpop.xlane.xlu0 %3634 }
0x12d0   :  { %v3636_v26 = vsub.f32 %v3629_v14, %v3635_v25 }
0x12d2   :  { %v3637_v27 = vmul.f32 1.442695, %v3636_v26 }
0x12d3   :  { %v3800_v28 = vpop.xlane.xlu1 %3799 }
0x12d4   :  { %4637 = vpow2.f32 %v3637_v27  ;;  %v3801_v29 = vsub.f32 %v3794_v22, %v3800_v28 }
0x12d6   :  { %v3802_v30 = vmul.f32 1.442695, %v3801_v29 }
0x12d7   :  { %v3809_v34 = vpop.permute.xlu1 %3808 }
0x12d8   :  { %4639 = vpow2.f32 %v3802_v30 }
0x12de   :  { %v4638_v32 = vpop.eup %4637  ;;  %v3550_v33 = vpop.f32.mrb[6].mxu1 }
0x12df   :  { %v4537_v19 = vadd.f32 %v4085_v31, %v3550_v33  ;;  %v4489_v35 = vpop.f32.mrb[7].mxu1  ;;  %4498 = vmatmul.mubr.msk.f32.vlgmr.msra.gmra.mrb[34].mxu1 %vm215_vm2, %v4638_v32  ;;  %v3639_v17 = vsel %vm215_vm2, %v4638_v32, 0.0 }
0x12e0   :  { %4506 = vmatpush3.msra.mxu1 %v3809_v34  ;;  %3640 = vadd.xlane.f32.xlu1 %v3639_v17 }
0x12e1   :  { %4034 = vst.msk [vmem:[#allocation4] sm:$0xff] %vm41_vm0, %v4537_v19  ;;  %4507 = vmatprep.mubr.msk.f32.mxu1 %vm4694_vm1, %v4693_v16  ;;  %4515 = vmatprep.subr.mxu1 %v4693_v16 }
0x12e2   :  { %v4640_v36 = vpop.eup %4639 }
0x12e3   :  { %4508 = vmatmul.mubr.msk.f32.vlgmr.msra.gmra.mrb[36].mxu1 %vm215_vm2, %v4640_v36  ;;  %v3804_v37 = vsel %vm215_vm2, %v4640_v36, 0.0 }
0x12e4   :  { %3805 = vadd.xlane.f32.xlu0 %v3804_v37  ;;  %4516 = vmatpush3.msra.mxu1 %v4078_v18 }
0x12e5   :  { %4517 = vmatprep.mubr.msk.f32.mxu1 %vm4694_vm1, %v4693_v16 }
0x136d   :  { %v3641_v38 = vpop.xlane.xlu1 %3640 }
0x136e   :  { %4641 = vrcp.f32 %v3641_v38 }
0x1371   :  { %v3806_v39 = vpop.xlane.xlu0 %3805 }
0x1372   :  { %4643 = vrcp.f32 %v3806_v39 }
0x1378   :  { %v4642_v40 = vpop.eup %4641 }
0x137c   :  { %v4644_v44 = vpop.eup %4643 }
0x13b2   :  { %v3715_v41 = vpop.f32.mrb[34].mxu1 }
0x13b3   :  { %v3719_v42 = vmul.f32 %v4642_v40, %v3715_v41  ;;  %v4499_v43 = vpop.f32.mrb[35].mxu1 }
0x13b5   :  { %4513 = vmatmul.mubr.msk.f32.vlgmr.msra.gmra.mrb[12].mxu0 %vm215_vm2, %v3719_v42 }
0x13b6   :  { %v3880_v45 = vpop.f32.mrb[36].mxu1 }
0x13b7   :  { %v3884_v46 = vmul.f32 %v4644_v44, %v3880_v45  ;;  %v4509_v47 = vpop.f32.mrb[37].mxu1 }
0x13b9   :  { %4518 = vmatmul.mubr.msk.f32.vlgmr.msra.gmra.mrb[12].mxu1 %vm215_vm2, %v3884_v46 }
0x1488   :  { %v3954_v48 = vpop.f32.mrb[12].mxu0 }
0x1489   :  { %v4538_v16 = vadd.f32 %v4084_v10, %v3954_v48  ;;  %v4514_v49 = vpop.f32.mrb[13].mxu0 }
0x148b   :  { %4036 = vst.msk [vmem:[#allocation2 + $0x8] sm:$0xff] %vm41_vm0, %v4538_v16 }
0x148c   :  { %v4028_v50 = vpop.f32.mrb[12].mxu1 }
0x148d   :  { %4656 = shalt.err (!%p4653_p4)
}
0x148e   :  { %s4657_s20 = scalar_lea.hbm %s5176_s3, 256 }
0x148f   :  { %p4658_p5 = scmp.ne.s32.totalorder %s5176_s3, %s4657_s20  ;;  %p4661_p6 = scmp.lt.u32.totalorder %s4657_s20, %s5176_s3 }
0x1491   :  { %p4663_p7 = pnand %p4661_p6, %p4658_p5 }
0x1493   :  { %4666 = shalt.err (!%p4663_p7)
}
0x1494   :  { %s4708_s25 = smov 128   ;;  %s4709_s26 = smov 8   ;;  %v4539_v51 = vadd.f32 %v4085_v31, %v4028_v50  ;;  %v4519_v52 = vpop.f32.mrb[13].mxu1 }
0x1495   :  { %4050 = dma.vmem_to_hbm [thread:$0]  %s4045_s14, 256, %s5176_s3, [#allocation3], %s4708_s25, %s4708_s25, %s4709_s26  }
0x1496   :  { %4038 = vst.msk [vmem:[#allocation4 + $0x8] sm:$0xff] %vm41_vm0, %v4539_v51  ;;  %s4667_s29 = scalar_lea.vmem %s4057_s16, 256  ;;  %p4672_p9 = scmp.lt.s32.totalorder %s4057_s16, %s4057_s16 }
0x1497   :  { %p4668_p8 = scmp.ne.s32.totalorder %s4057_s16, %s4667_s29  ;;  %p4673_p10 = scmp.lt.s32.totalorder %s4667_s29, %s4667_s29 }
0x1499   :  { %p4674_p11 = por %p4673_p10, %p4672_p9 }
0x149b   :  { %p4675_p12 = pnand %p4674_p11, %p4668_p8 }
0x149d   :  { %4678 = shalt.err (!%p4675_p12)
}
0x149e   :  { %s4679_s6 = scalar_lea.hbm %s5177_s4, 256 }
0x149f   :  { %p4680_p13 = scmp.ne.s32.totalorder %s5177_s4, %s4679_s6  ;;  %p4683_p0 = scmp.lt.u32.totalorder %s4679_s6, %s5177_s4 }
0x14a1   :  { %p4685_p1 = pnand %p4683_p0, %p4680_p13 }
0x14a3   :  { %4688 = shalt.err (!%p4685_p1)
}
0x14a4   :  { %4062 = dma.vmem_to_hbm [thread:$0]  %s4057_s16, 256, %s5177_s4, [#allocation5], %s4708_s25, %s4708_s25, %s4709_s26  }
0x14a5   :  { %4689 = dma.done.wait [#allocation3], 256  }
0x14a6   :  { %4690 = vsyncadd [#allocation3], 4294967040 }
0x14a7   :  { %4691 = dma.done.wait [#allocation5], 256  }
0x14a8   :  { %4692 = vsyncadd [#allocation5], 4294967040 }
0x14a9   :  { %4069 = vsyncpa [#allocation3], 1 }
0x14aa   :  { %4070 = vsyncpa [#allocation5], 1 }

</bundles_post_ra>
